<compile_context>
chip_gen: v7x
topology: tpu7x:2x2x1
jax: 0.10.0
libtpu: 0.0.40
codegen_flags: <defaults>
</compile_context>

<pallas_src>
import functools

import jax
import jax.numpy as jnp
import numpy as np
from jax.experimental import pallas as pl
from jax.experimental.pallas import tpu as pltpu


def _gated_attention_kernel(x_ref, mem_ref, mask_ref,
                            w1_ref, b1_ref, wm_ref, bm_ref,
                            w2a_ref, w2b_ref, b2_ref,
                            out_ref, *, inv_scale, gate_method):
    B, Lq, d_in = x_ref.shape
    _, Lm, d_mem = mem_ref.shape
    hid = w1_ref.shape[1]
    cdt = w1_ref.dtype  # MXU input dtype (float32 or bfloat16)

    x = x_ref[...]        # (B, Lq, d_in)  f32
    mem = mem_ref[...]    # (B, Lm, d_mem) f32

    # ---- Linear1 / LinearM: flatten batch into sublanes -> one big MXU pass ----
    x2 = x.reshape(B * Lq, d_in)                 # f32 reshape (layout no-op)
    mem2 = mem.reshape(B * Lm, d_mem)
    x2c = x2.astype(cdt)
    input_dot = jnp.maximum(
        jnp.dot(x2c, w1_ref[...], preferred_element_type=jnp.float32)
        + b1_ref[...], 0.0)                      # (B*Lq, hid) f32
    memory_dot = jnp.maximum(
        jnp.dot(mem2.astype(cdt), wm_ref[...], preferred_element_type=jnp.float32)
        + bm_ref[...], 0.0)                      # (B*Lm, hid) f32

    input_dot = input_dot.reshape(B, Lq, hid).astype(cdt)
    memory_dot = memory_dot.reshape(B, Lm, hid).astype(cdt)

    # ---- attention scores: contract on hid without an explicit transpose ----
    att = jnp.einsum('bld,bmd->blm', input_dot, memory_dot,
                     preferred_element_type=jnp.float32) * inv_scale  # (B,Lq,Lm)

    # additive mask: single select on the small (B, 1, Lm) tile, broadcast add
    add_mask = jnp.where(mask_ref[...] != 0.0,
                         jnp.float32(0.0), jnp.float32(-1e30))        # (B,1,Lm)
    att = att + add_mask

    # numerically-stable softmax over the memory axis (f32)
    att_max = jnp.max(att, axis=-1, keepdims=True)
    p = jnp.exp(att - att_max)
    weight_one = p * pl.reciprocal(jnp.sum(p, axis=-1, keepdims=True),
                                   approx=False)

    # output_one = weight_one @ memory (batched)
    output_one = jnp.einsum('blm,bmd->bld', weight_one.astype(cdt),
                            mem.astype(cdt),
                            preferred_element_type=jnp.float32)       # (B,Lq,d_mem) f32
    out1_2 = output_one.reshape(B * Lq, d_mem)                        # f32

    # ---- Linear2(cat([input, branch], -1)) as a split, batch-flattened matmul ----
    if gate_method == 'no_gate':
        z = (jnp.dot(x2c, w2a_ref[...], preferred_element_type=jnp.float32)
             + jnp.dot(out1_2.astype(cdt), w2b_ref[...],
                       preferred_element_type=jnp.float32)
             + b2_ref[...])
        out = jnp.maximum(z, 0.0)
    elif gate_method == 'gate_att_or':
        diff = (x2 - out1_2).astype(cdt)
        z = (jnp.dot(x2c, w2a_ref[...], preferred_element_type=jnp.float32)
             + jnp.dot(diff, w2b_ref[...], preferred_element_type=jnp.float32)
             + b2_ref[...])
        out = jnp.maximum(z, 0.0)
    elif gate_method == 'gate_att_up':
        z = (jnp.dot(x2c, w2a_ref[...], preferred_element_type=jnp.float32)
             + jnp.dot(out1_2.astype(cdt), w2b_ref[...],
                       preferred_element_type=jnp.float32)
             + b2_ref[...])
        # TODO(synk): if profiling shows the EUP slot saturates, fuse
        # sigmoid(z)*tanh(z) via t=exp(-z): (1-t)/(1+t*t) with approx reciprocal.
        out = jax.nn.sigmoid(z) * jnp.tanh(z)
    else:
        raise ValueError('Not support gate method: {}'.format(gate_method))

    out_ref[...] = out.reshape(out_ref.shape).astype(out_ref.dtype)


def _pick_batch_block(N, Ld, target_rows=512):
    """Largest divisor of N with ~target_rows flattened rows per grid step,
    keeping >=2 grid steps when that still fills the MXU (v7x megacore)."""
    want = max(1, target_rows // max(Ld, 1))
    best = 1
    for d in range(1, N + 1):
        if N % d == 0 and d <= want:
            best = d
    if best == N and N > 1 and (N // 2) * Ld >= 128:
        half = N // 2
        for d in range(half, 0, -1):
            if N % d == 0:
                best = d
                break
    return best


def _pick_q_tile(Ld, max_tile=512):
    """Tile the query axis for large Ld so the (Ld_tile, Lm) score matrix fits
    comfortably in VMEM (v7x: 64 MiB physical)."""
    if Ld <= max_tile:
        return Ld
    for t in range(max_tile, 7, -1):
        if Ld % t == 0 and t % 8 == 0:
            return t
    return Ld
    # TODO(synk): for very long Lm, switch the softmax to an online
    # (flash-style) accumulation over Lm tiles with an 'arbitrary' grid axis.


def gated_attention(inp, memory, mask, params, gate_method='gate_att_up',
                    mxu_dtype=jnp.float32):
    """Pallas implementation of GatedAttention.forward.

    inp:    (N, Ld, d_in)   float32
    memory: (N, Lm, d_mem)  float32
    mask:   (N, Lm)         float32 (1 = keep, 0 = masked)
    mxu_dtype: dtype fed to the MXU (jnp.bfloat16 recommended on v5e/v6e/v7x;
               accumulation / softmax / epilogue stay float32).
    returns (output, memory) with output (N, Ld, hid) float32.
    """
    N, Ld, d_in = inp.shape
    _, Lm, d_mem = memory.shape
    w1, b1, wm, bm, w2, b2 = (params['w1'], params['b1'], params['wm'],
                              params['bm'], params['w2'], params['b2'])
    hid = w1.shape[1]
    inv_scale = float(1.0 / np.sqrt(d_in))

    # Split the second linear host-side (no in-kernel Ref slicing / relayout).
    w2_a = w2[:d_in, :]
    w2_b = w2[d_in:, :]

    if mxu_dtype != jnp.float32:
        w1_c, wm_c = w1.astype(mxu_dtype), wm.astype(mxu_dtype)
        w2a_c, w2b_c = w2_a.astype(mxu_dtype), w2_b.astype(mxu_dtype)
    else:
        w1_c, wm_c, w2a_c, w2b_c = w1, wm, w2_a, w2_b

    mask3 = mask.reshape(N, 1, Lm).astype(jnp.float32)

    B_blk = _pick_batch_block(N, Ld)
    Ld_tile = _pick_q_tile(Ld)
    grid = (N // B_blk, Ld // Ld_tile)

    kernel = functools.partial(_gated_attention_kernel,
                               inv_scale=inv_scale, gate_method=gate_method)

    operands = (inp, memory, mask3, w1_c, b1, wm_c, bm, w2a_c, w2b_c, b2)

    flops = 2 * N * (Ld * d_in * hid + Lm * d_mem * hid
                     + Ld * Lm * hid + Ld * Lm * d_mem
                     + Ld * (d_in + d_mem) * hid)
    transcendentals = N * Ld * Lm + (2 * N * Ld * hid
                                     if gate_method == 'gate_att_up' else 0)
    bytes_accessed = (sum(int(a.size) * a.dtype.itemsize for a in operands)
                      + N * Ld * hid * 4)
    cost = pl.CostEstimate(flops=int(flops),
                           transcendentals=int(transcendentals),
                           bytes_accessed=int(bytes_accessed))

    def _build(single_buffer_weights):
        if single_buffer_weights:
            def wspec(shape):
                return pl.BlockSpec(shape, lambda b, q: (0, 0),
                                    pipeline_mode=pl.Buffered(1))
        else:
            def wspec(shape):
                return pl.BlockSpec(shape, lambda b, q: (0, 0))

        return pl.pallas_call(
            kernel,
            out_shape=jax.ShapeDtypeStruct((N, Ld, hid), jnp.float32),
            grid_spec=pltpu.PrefetchScalarGridSpec(
                num_scalar_prefetch=0,
                grid=grid,
                in_specs=[
                    pl.BlockSpec((B_blk, Ld_tile, d_in), lambda b, q: (b, q, 0)),
                    pl.BlockSpec((B_blk, Lm, d_mem), lambda b, q: (b, 0, 0)),
                    pl.BlockSpec((B_blk, 1, Lm), lambda b, q: (b, 0, 0)),
                    wspec((d_in, hid)),
                    wspec((1, hid)),
                    wspec((d_mem, hid)),
                    wspec((1, hid)),
                    wspec((d_in, hid)),
                    wspec((d_mem, hid)),
                    wspec((1, hid)),
                ],
                out_specs=pl.BlockSpec((B_blk, Ld_tile, hid),
                                       lambda b, q: (b, q, 0)),
            ),
            compiler_params=pltpu.CompilerParams(
                dimension_semantics=("parallel", "parallel"),
                vmem_limit_bytes=48 * 1024 * 1024),
            cost_estimate=cost,
        )

    try:
        out = _build(True)(*operands)        # single-buffered resident weights
    except Exception:
        # pl.Buffered(1) not supported by this jax version -> plain constant
        # blocks (still DMA'd only once; just double-buffered VMEM footprint).
        out = _build(False)(*operands)

    return out, memory


def _reference(inp, memory, mask, params, gate_method='gate_att_up'):
    """Plain-JAX reference mirroring the PyTorch forward."""
    d_in = inp.shape[-1]
    dot_scale = np.sqrt(d_in)
    input_dot = jax.nn.relu(inp @ params['w1'] + params['b1'][0])
    memory_dot = jax.nn.relu(memory @ params['wm'] + params['bm'][0])
    att = jnp.einsum('bld,bmd->blm', input_dot, memory_dot) / dot_scale
    att = att - 1e30 * (1.0 - mask[:, None, :])
    weight_one = jax.nn.softmax(att, axis=-1)
    output_one = jnp.einsum('blm,bmd->bld', weight_one, memory)
    if gate_method == 'no_gate':
        z = jnp.concatenate([inp, output_one], -1) @ params['w2'] + params['b2'][0]
        out = jax.nn.relu(z)
    elif gate_method == 'gate_att_or':
        z = (jnp.concatenate([inp, inp - output_one], -1) @ params['w2']
             + params['b2'][0])
        out = jax.nn.relu(z)
    else:  # gate_att_up
        z = jnp.concatenate([inp, output_one], -1) @ params['w2'] + params['b2'][0]
        out = jax.nn.sigmoid(z) * jnp.tanh(z)
    return out, memory


if __name__ == "__main__":
    N, Ld, Lm = 2, 16, 8
    d_in, d_mem, hid = 32, 32, 32

    key = jax.random.PRNGKey(0)
    k = jax.random.split(key, 8)

    inp = jax.random.normal(k[0], (N, Ld, d_in), dtype=jnp.float32)
    memory = jax.random.normal(k[1], (N, Lm, d_mem), dtype=jnp.float32)
    # query mask: first example fully valid, second half-masked
    lengths = jnp.array([Lm, Lm // 2])
    mask = (jnp.arange(Lm)[None, :] < lengths[:, None]).astype(jnp.float32)

    params = {
        'w1': 0.1 * jax.random.normal(k[2], (d_in, hid), dtype=jnp.float32),
        'b1': 0.1 * jax.random.normal(k[3], (1, hid), dtype=jnp.float32),
        'wm': 0.1 * jax.random.normal(k[4], (d_mem, hid), dtype=jnp.float32),
        'bm': 0.1 * jax.random.normal(k[5], (1, hid), dtype=jnp.float32),
        'w2': 0.1 * jax.random.normal(k[6], (d_in + d_mem, hid), dtype=jnp.float32),
        'b2': 0.1 * jax.random.normal(k[7], (1, hid), dtype=jnp.float32),
    }

    # f32 MXU path: exact check against the reference, all gate variants.
    for gm in ('gate_att_up', 'no_gate', 'gate_att_or'):
        out, mem_out = gated_attention(inp, memory, mask, params,
                                       gate_method=gm, mxu_dtype=jnp.float32)
        jax.block_until_ready(out)
        ref_out, _ = _reference(inp, memory, mask, params, gate_method=gm)
        np.testing.assert_allclose(np.asarray(out), np.asarray(ref_out),
                                   rtol=1e-5, atol=1e-5)
        assert mem_out.shape == memory.shape

    # bf16 MXU path (recommended on v5e/v6e/v7x): relaxed tolerance.
    out_bf16, _ = gated_attention(inp, memory, mask, params,
                                  gate_method='gate_att_up',
                                  mxu_dtype=jnp.bfloat16)
    jax.block_until_ready(out_bf16)
    ref_out, _ = _reference(inp, memory, mask, params, gate_method='gate_att_up')
    np.testing.assert_allclose(np.asarray(out_bf16), np.asarray(ref_out),
                               rtol=2e-2, atol=2e-2)

    print("KERNEL_OK")
</pallas_src>

<mosaic_0001>
module attributes {stable_mosaic.version = 11 : i64} {
  func.func @_gated_attention_kernel(%arg0: i32, %arg1: i32, %arg2: memref<2x16x32xf32, #tpu.memory_space<vmem>>, %arg3: memref<2x8x32xf32, #tpu.memory_space<vmem>>, %arg4: memref<2x1x8xf32, #tpu.memory_space<vmem>>, %arg5: memref<32x32xf32, #tpu.memory_space<vmem>>, %arg6: memref<1x32xf32, #tpu.memory_space<vmem>>, %arg7: memref<32x32xf32, #tpu.memory_space<vmem>>, %arg8: memref<1x32xf32, #tpu.memory_space<vmem>>, %arg9: memref<32x32xf32, #tpu.memory_space<vmem>>, %arg10: memref<32x32xf32, #tpu.memory_space<vmem>>, %arg11: memref<1x32xf32, #tpu.memory_space<vmem>>, %arg12: memref<2x16x32xf32, #tpu.memory_space<vmem>>) attributes {dimension_semantics = [#tpu.dimension_semantics<parallel>, #tpu.dimension_semantics<parallel>], iteration_bounds = array<i64: 1, 1>, scalar_prefetch = 0 : i64, scratch_operands = 0 : i64, tpu.core_type = #tpu.core_type<tc>, window_params = [{transform_indices = @transform_0, window_bounds = array<i64: 2, 16, 32>}, {transform_indices = @transform_1, window_bounds = array<i64: 2, 8, 32>}, {transform_indices = @transform_2, window_bounds = array<i64: 2, 1, 8>}, {pipeline_mode = #tpu.pipeline_mode<synchronous>, transform_indices = @transform_3, window_bounds = array<i64: 32, 32>}, {pipeline_mode = #tpu.pipeline_mode<synchronous>, transform_indices = @transform_4, window_bounds = array<i64: 1, 32>}, {pipeline_mode = #tpu.pipeline_mode<synchronous>, transform_indices = @transform_5, window_bounds = array<i64: 32, 32>}, {pipeline_mode = #tpu.pipeline_mode<synchronous>, transform_indices = @transform_6, window_bounds = array<i64: 1, 32>}, {pipeline_mode = #tpu.pipeline_mode<synchronous>, transform_indices = @transform_7, window_bounds = array<i64: 32, 32>}, {pipeline_mode = #tpu.pipeline_mode<synchronous>, transform_indices = @transform_8, window_bounds = array<i64: 32, 32>}, {pipeline_mode = #tpu.pipeline_mode<synchronous>, transform_indices = @transform_9, window_bounds = array<i64: 1, 32>}, {transform_indices = @transform_10, window_bounds = array<i64: 2, 16, 32>}]} {
    %c0 = arith.constant 0 : index
    %c0_0 = arith.constant 0 : index
    %c0_1 = arith.constant 0 : index
    %0 = vector.load %arg2[%c0, %c0_0, %c0_1] : memref<2x16x32xf32, #tpu.memory_space<vmem>>, vector<2x16x32xf32>
    %c0_2 = arith.constant 0 : index
    %c0_3 = arith.constant 0 : index
    %c0_4 = arith.constant 0 : index
    %1 = vector.load %arg3[%c0_2, %c0_3, %c0_4] : memref<2x8x32xf32, #tpu.memory_space<vmem>>, vector<2x8x32xf32>
    %2 = vector.shape_cast %0 : vector<2x16x32xf32> to vector<32x32xf32>
    %3 = vector.shape_cast %1 : vector<2x8x32xf32> to vector<16x32xf32>
    %c0_5 = arith.constant 0 : index
    %c0_6 = arith.constant 0 : index
    %4 = vector.load %arg5[%c0_5, %c0_6] : memref<32x32xf32, #tpu.memory_space<vmem>>, vector<32x32xf32>
    %cst = arith.constant dense<0.000000e+00> : vector<32x32xf32>
    %5 = tpu.matmul %2, %4, %cst {dimension_numbers = #tpu.dot_dimension_numbers<[1], [0], [0], [1], [0, 0, 1, 1], [], []>} : vector<32x32xf32>, vector<32x32xf32>, vector<32x32xf32> -> vector<32x32xf32>
    %c0_7 = arith.constant 0 : index
    %c0_8 = arith.constant 0 : index
    %6 = vector.load %arg6[%c0_7, %c0_8] : memref<1x32xf32, #tpu.memory_space<vmem>>, vector<1x32xf32>
    %7 = vector.broadcast %6 : vector<1x32xf32> to vector<32x32xf32>
    %8 = arith.addf %5, %7 : vector<32x32xf32>
    %cst_9 = arith.constant 0.000000e+00 : f32
    %9 = vector.broadcast %cst_9 : f32 to vector<32x32xf32>
    %10 = arith.maximumf %8, %9 : vector<32x32xf32>
    %c0_10 = arith.constant 0 : index
    %c0_11 = arith.constant 0 : index
    %11 = vector.load %arg7[%c0_10, %c0_11] : memref<32x32xf32, #tpu.memory_space<vmem>>, vector<32x32xf32>
    %cst_12 = arith.constant dense<0.000000e+00> : vector<16x32xf32>
    %12 = tpu.matmul %3, %11, %cst_12 {dimension_numbers = #tpu.dot_dimension_numbers<[1], [0], [0], [1], [0, 0, 1, 1], [], []>} : vector<16x32xf32>, vector<32x32xf32>, vector<16x32xf32> -> vector<16x32xf32>
    %c0_13 = arith.constant 0 : index
    %c0_14 = arith.constant 0 : index
    %13 = vector.load %arg8[%c0_13, %c0_14] : memref<1x32xf32, #tpu.memory_space<vmem>>, vector<1x32xf32>
    %14 = vector.broadcast %13 : vector<1x32xf32> to vector<16x32xf32>
    %15 = arith.addf %12, %14 : vector<16x32xf32>
    %cst_15 = arith.constant 0.000000e+00 : f32
    %16 = vector.broadcast %cst_15 : f32 to vector<16x32xf32>
    %17 = arith.maximumf %15, %16 : vector<16x32xf32>
    %18 = vector.shape_cast %10 : vector<32x32xf32> to vector<2x16x32xf32>
    %19 = vector.shape_cast %17 : vector<16x32xf32> to vector<2x8x32xf32>
    "tpu.trace_start"() <{level = 10 : i32, message = "bld,bmd->blm"}> : () -> ()
    %cst_16 = arith.constant dense<0.000000e+00> : vector<2x16x8xf32>
    %20 = tpu.matmul %18, %19, %cst_16 {dimension_numbers = #tpu.dot_dimension_numbers<[2], [2], [1], [1], [0, 0, 0, 1, 1, 1], [0], [0]>} : vector<2x16x32xf32>, vector<2x8x32xf32>, vector<2x16x8xf32> -> vector<2x16x8xf32>
    "tpu.trace_stop"() : () -> ()
    %cst_17 = arith.constant 0.176776692 : f32
    %21 = vector.broadcast %cst_17 : f32 to vector<2x16x8xf32>
    %22 = arith.mulf %20, %21 : vector<2x16x8xf32>
    %c0_18 = arith.constant 0 : index
    %c0_19 = arith.constant 0 : index
    %c0_20 = arith.constant 0 : index
    %23 = vector.load %arg4[%c0_18, %c0_19, %c0_20] : memref<2x1x8xf32, #tpu.memory_space<vmem>>, vector<2x1x8xf32>
    %cst_21 = arith.constant 0.000000e+00 : f32
    %24 = vector.broadcast %cst_21 : f32 to vector<2x1x8xf32>
    %25 = arith.cmpf one, %23, %24 : vector<2x1x8xf32>
    %cst_22 = arith.constant 0.000000e+00 : f32
    %cst_23 = arith.constant -1.000000e+30 : f32
    %26 = vector.broadcast %cst_22 : f32 to vector<2x1x8xf32>
    %27 = vector.broadcast %cst_23 : f32 to vector<2x1x8xf32>
    %28 = arith.select %25, %26, %27 : vector<2x1x8xi1>, vector<2x1x8xf32>
    %29 = vector.broadcast %28 : vector<2x1x8xf32> to vector<2x16x8xf32>
    %30 = arith.addf %22, %29 : vector<2x16x8xf32>
    %cst_24 = arith.constant dense<0xFF800000> : vector<2x16xf32>
    %31 = vector.multi_reduction <maximumf>, %30, %cst_24 [2] : vector<2x16x8xf32> to vector<2x16xf32>
    %32 = vector.shape_cast %31 : vector<2x16xf32> to vector<2x16x1xf32>
    %33 = vector.broadcast %32 : vector<2x16x1xf32> to vector<2x16x8xf32>
    %34 = arith.subf %30, %33 : vector<2x16x8xf32>
    %35 = math.exp %34 : vector<2x16x8xf32>
    %cst_25 = arith.constant dense<0.000000e+00> : vector<2x16xf32>
    %36 = vector.multi_reduction <add>, %35, %cst_25 [2] : vector<2x16x8xf32> to vector<2x16xf32>
    %37 = vector.shape_cast %36 : vector<2x16xf32> to vector<2x16x1xf32>
    %38 = tpu.reciprocal %37 : vector<2x16x1xf32> -> vector<2x16x1xf32>
    %39 = vector.broadcast %38 : vector<2x16x1xf32> to vector<2x16x8xf32>
    %40 = arith.mulf %35, %39 : vector<2x16x8xf32>
    "tpu.trace_start"() <{level = 10 : i32, message = "blm,bmd->bld"}> : () -> ()
    %cst_26 = arith.constant dense<0.000000e+00> : vector<2x16x32xf32>
    %41 = tpu.matmul %40, %1, %cst_26 {dimension_numbers = #tpu.dot_dimension_numbers<[2], [1], [1], [2], [0, 0, 0, 1, 1, 2], [0], [0]>} : vector<2x16x8xf32>, vector<2x8x32xf32>, vector<2x16x32xf32> -> vector<2x16x32xf32>
    "tpu.trace_stop"() : () -> ()
    %42 = vector.shape_cast %41 : vector<2x16x32xf32> to vector<32x32xf32>
    %c0_27 = arith.constant 0 : index
    %c0_28 = arith.constant 0 : index
    %43 = vector.load %arg9[%c0_27, %c0_28] : memref<32x32xf32, #tpu.memory_space<vmem>>, vector<32x32xf32>
    %cst_29 = arith.constant dense<0.000000e+00> : vector<32x32xf32>
    %44 = tpu.matmul %2, %43, %cst_29 {dimension_numbers = #tpu.dot_dimension_numbers<[1], [0], [0], [1], [0, 0, 1, 1], [], []>} : vector<32x32xf32>, vector<32x32xf32>, vector<32x32xf32> -> vector<32x32xf32>
    %c0_30 = arith.constant 0 : index
    %c0_31 = arith.constant 0 : index
    %45 = vector.load %arg10[%c0_30, %c0_31] : memref<32x32xf32, #tpu.memory_space<vmem>>, vector<32x32xf32>
    %cst_32 = arith.constant dense<0.000000e+00> : vector<32x32xf32>
    %46 = tpu.matmul %42, %45, %cst_32 {dimension_numbers = #tpu.dot_dimension_numbers<[1], [0], [0], [1], [0, 0, 1, 1], [], []>} : vector<32x32xf32>, vector<32x32xf32>, vector<32x32xf32> -> vector<32x32xf32>
    %47 = arith.addf %44, %46 : vector<32x32xf32>
    %c0_33 = arith.constant 0 : index
    %c0_34 = arith.constant 0 : index
    %48 = vector.load %arg11[%c0_33, %c0_34] : memref<1x32xf32, #tpu.memory_space<vmem>>, vector<1x32xf32>
    %49 = vector.broadcast %48 : vector<1x32xf32> to vector<32x32xf32>
    %50 = arith.addf %47, %49 : vector<32x32xf32>
    %51 = arith.negf %50 : vector<32x32xf32>
    %52 = math.exp %51 : vector<32x32xf32>
    %cst_35 = arith.constant 1.000000e+00 : f32
    %53 = vector.broadcast %cst_35 : f32 to vector<32x32xf32>
    %54 = arith.addf %53, %52 : vector<32x32xf32>
    %55 = arith.divf %53, %54 : vector<32x32xf32>
    %56 = math.tanh %50 : vector<32x32xf32>
    %57 = arith.mulf %55, %56 : vector<32x32xf32>
    %58 = vector.shape_cast %57 : vector<32x32xf32> to vector<2x16x32xf32>
    %c0_36 = arith.constant 0 : index
    %c0_37 = arith.constant 0 : index
    %c0_38 = arith.constant 0 : index
    %59 = vector.load %arg12[%c0_36, %c0_37, %c0_38] : memref<2x16x32xf32, #tpu.memory_space<vmem>>, vector<2x16x32xf32>
    tpu.vector_store %arg12[%c0_36, %c0_37, %c0_38], %58 {strides = array<i32>} : memref<2x16x32xf32, #tpu.memory_space<vmem>>, vector<2x16x32xf32>,
    return
  }
  func.func @transform_0(%arg0: i32, %arg1: i32) -> (i32, i32, i32) {
    %c0_i32 = arith.constant 0 : i32
    %c0_i32_0 = arith.constant 0 : i32
    return %arg0, %arg1, %c0_i32 : i32, i32, i32
  }
  func.func @transform_1(%arg0: i32, %arg1: i32) -> (i32, i32, i32) {
    %c0_i32 = arith.constant 0 : i32
    %c0_i32_0 = arith.constant 0 : i32
    %c0_i32_1 = arith.constant 0 : i32
    return %arg0, %c0_i32, %c0_i32_0 : i32, i32, i32
  }
  func.func @transform_2(%arg0: i32, %arg1: i32) -> (i32, i32, i32) {
    %c0_i32 = arith.constant 0 : i32
    %c0_i32_0 = arith.constant 0 : i32
    %c0_i32_1 = arith.constant 0 : i32
    return %arg0, %c0_i32, %c0_i32_0 : i32, i32, i32
  }
  func.func @transform_3(%arg0: i32, %arg1: i32) -> (i32, i32) {
    %c0_i32 = arith.constant 0 : i32
    %c0_i32_0 = arith.constant 0 : i32
    %c0_i32_1 = arith.constant 0 : i32
    return %c0_i32, %c0_i32_0 : i32, i32
  }
  func.func @transform_4(%arg0: i32, %arg1: i32) -> (i32, i32) {
    %c0_i32 = arith.constant 0 : i32
    %c0_i32_0 = arith.constant 0 : i32
    %c0_i32_1 = arith.constant 0 : i32
    return %c0_i32, %c0_i32_0 : i32, i32
  }
  func.func @transform_5(%arg0: i32, %arg1: i32) -> (i32, i32) {
    %c0_i32 = arith.constant 0 : i32
    %c0_i32_0 = arith.constant 0 : i32
    %c0_i32_1 = arith.constant 0 : i32
    return %c0_i32, %c0_i32_0 : i32, i32
  }
  func.func @transform_6(%arg0: i32, %arg1: i32) -> (i32, i32) {
    %c0_i32 = arith.constant 0 : i32
    %c0_i32_0 = arith.constant 0 : i32
    %c0_i32_1 = arith.constant 0 : i32
    return %c0_i32, %c0_i32_0 : i32, i32
  }
  func.func @transform_7(%arg0: i32, %arg1: i32) -> (i32, i32) {
    %c0_i32 = arith.constant 0 : i32
    %c0_i32_0 = arith.constant 0 : i32
    %c0_i32_1 = arith.constant 0 : i32
    return %c0_i32, %c0_i32_0 : i32, i32
  }
  func.func @transform_8(%arg0: i32, %arg1: i32) -> (i32, i32) {
    %c0_i32 = arith.constant 0 : i32
    %c0_i32_0 = arith.constant 0 : i32
    %c0_i32_1 = arith.constant 0 : i32
    return %c0_i32, %c0_i32_0 : i32, i32
  }
  func.func @transform_9(%arg0: i32, %arg1: i32) -> (i32, i32) {
    %c0_i32 = arith.constant 0 : i32
    %c0_i32_0 = arith.constant 0 : i32
    %c0_i32_1 = arith.constant 0 : i32
    return %c0_i32, %c0_i32_0 : i32, i32
  }
  func.func @transform_10(%arg0: i32, %arg1: i32) -> (i32, i32, i32) {
    %c0_i32 = arith.constant 0 : i32
    %c0_i32_0 = arith.constant 0 : i32
    return %arg0, %arg1, %c0_i32 : i32, i32, i32
  }
}

module attributes {stable_mosaic.version = 11 : i64} {
  func.func @_gated_attention_kernel(%arg0: i32, %arg1: i32, %arg2: memref<2x16x32xf32, #tpu.memory_space<vmem>>, %arg3: memref<2x8x32xf32, #tpu.memory_space<vmem>>, %arg4: memref<2x1x8xf32, #tpu.memory_space<vmem>>, %arg5: memref<32x32xf32, #tpu.memory_space<vmem>>, %arg6: memref<1x32xf32, #tpu.memory_space<vmem>>, %arg7: memref<32x32xf32, #tpu.memory_space<vmem>>, %arg8: memref<1x32xf32, #tpu.memory_space<vmem>>, %arg9: memref<32x32xf32, #tpu.memory_space<vmem>>, %arg10: memref<32x32xf32, #tpu.memory_space<vmem>>, %arg11: memref<1x32xf32, #tpu.memory_space<vmem>>, %arg12: memref<2x16x32xf32, #tpu.memory_space<vmem>>) attributes {dimension_semantics = [#tpu.dimension_semantics<parallel>, #tpu.dimension_semantics<parallel>], iteration_bounds = array<i64: 1, 1>, scalar_prefetch = 0 : i64, scratch_operands = 0 : i64, tpu.core_type = #tpu.core_type<tc>, window_params = [{transform_indices = @transform_0, window_bounds = array<i64: 2, 16, 32>}, {transform_indices = @transform_1, window_bounds = array<i64: 2, 8, 32>}, {transform_indices = @transform_2, window_bounds = array<i64: 2, 1, 8>}, {pipeline_mode = #tpu.pipeline_mode<synchronous>, transform_indices = @transform_3, window_bounds = array<i64: 32, 32>}, {pipeline_mode = #tpu.pipeline_mode<synchronous>, transform_indices = @transform_4, window_bounds = array<i64: 1, 32>}, {pipeline_mode = #tpu.pipeline_mode<synchronous>, transform_indices = @transform_5, window_bounds = array<i64: 32, 32>}, {pipeline_mode = #tpu.pipeline_mode<synchronous>, transform_indices = @transform_6, window_bounds = array<i64: 1, 32>}, {pipeline_mode = #tpu.pipeline_mode<synchronous>, transform_indices = @transform_7, window_bounds = array<i64: 32, 32>}, {pipeline_mode = #tpu.pipeline_mode<synchronous>, transform_indices = @transform_8, window_bounds = array<i64: 32, 32>}, {pipeline_mode = #tpu.pipeline_mode<synchronous>, transform_indices = @transform_9, window_bounds = array<i64: 1, 32>}, {transform_indices = @transform_10, window_bounds = array<i64: 2, 16, 32>}]} {
    %c0 = arith.constant 0 : index
    %c0_0 = arith.constant 0 : index
    %c0_1 = arith.constant 0 : index
    %0 = vector.load %arg2[%c0, %c0_0, %c0_1] : memref<2x16x32xf32, #tpu.memory_space<vmem>>, vector<2x16x32xf32>
    %c0_2 = arith.constant 0 : index
    %c0_3 = arith.constant 0 : index
    %c0_4 = arith.constant 0 : index
    %1 = vector.load %arg3[%c0_2, %c0_3, %c0_4] : memref<2x8x32xf32, #tpu.memory_space<vmem>>, vector<2x8x32xf32>
    %2 = vector.shape_cast %0 : vector<2x16x32xf32> to vector<32x32xf32>
    %3 = vector.shape_cast %1 : vector<2x8x32xf32> to vector<16x32xf32>
    %c0_5 = arith.constant 0 : index
    %c0_6 = arith.constant 0 : index
    %4 = vector.load %arg5[%c0_5, %c0_6] : memref<32x32xf32, #tpu.memory_space<vmem>>, vector<32x32xf32>
    %cst = arith.constant dense<0.000000e+00> : vector<32x32xf32>
    %5 = tpu.matmul %2, %4, %cst {dimension_numbers = #tpu.dot_dimension_numbers<[1], [0], [0], [1], [0, 0, 1, 1], [], []>} : vector<32x32xf32>, vector<32x32xf32>, vector<32x32xf32> -> vector<32x32xf32>
    %c0_7 = arith.constant 0 : index
    %c0_8 = arith.constant 0 : index
    %6 = vector.load %arg6[%c0_7, %c0_8] : memref<1x32xf32, #tpu.memory_space<vmem>>, vector<1x32xf32>
    %7 = vector.broadcast %6 : vector<1x32xf32> to vector<32x32xf32>
    %8 = arith.addf %5, %7 : vector<32x32xf32>
    %cst_9 = arith.constant 0.000000e+00 : f32
    %9 = vector.broadcast %cst_9 : f32 to vector<32x32xf32>
    %10 = arith.maximumf %8, %9 : vector<32x32xf32>
    %c0_10 = arith.constant 0 : index
    %c0_11 = arith.constant 0 : index
    %11 = vector.load %arg7[%c0_10, %c0_11] : memref<32x32xf32, #tpu.memory_space<vmem>>, vector<32x32xf32>
    %cst_12 = arith.constant dense<0.000000e+00> : vector<16x32xf32>
    %12 = tpu.matmul %3, %11, %cst_12 {dimension_numbers = #tpu.dot_dimension_numbers<[1], [0], [0], [1], [0, 0, 1, 1], [], []>} : vector<16x32xf32>, vector<32x32xf32>, vector<16x32xf32> -> vector<16x32xf32>
    %c0_13 = arith.constant 0 : index
    %c0_14 = arith.constant 0 : index
    %13 = vector.load %arg8[%c0_13, %c0_14] : memref<1x32xf32, #tpu.memory_space<vmem>>, vector<1x32xf32>
    %14 = vector.broadcast %13 : vector<1x32xf32> to vector<16x32xf32>
    %15 = arith.addf %12, %14 : vector<16x32xf32>
    %cst_15 = arith.constant 0.000000e+00 : f32
    %16 = vector.broadcast %cst_15 : f32 to vector<16x32xf32>
    %17 = arith.maximumf %15, %16 : vector<16x32xf32>
    %18 = vector.shape_cast %10 : vector<32x32xf32> to vector<2x16x32xf32>
    %19 = vector.shape_cast %17 : vector<16x32xf32> to vector<2x8x32xf32>
    "tpu.trace_start"() <{level = 10 : i32, message = "bld,bmd->blm"}> : () -> ()
    %cst_16 = arith.constant dense<0.000000e+00> : vector<2x16x8xf32>
    %20 = tpu.matmul %18, %19, %cst_16 {dimension_numbers = #tpu.dot_dimension_numbers<[2], [2], [1], [1], [0, 0, 0, 1, 1, 1], [0], [0]>} : vector<2x16x32xf32>, vector<2x8x32xf32>, vector<2x16x8xf32> -> vector<2x16x8xf32>
    "tpu.trace_stop"() : () -> ()
    %cst_17 = arith.constant 0.176776692 : f32
    %21 = vector.broadcast %cst_17 : f32 to vector<2x16x8xf32>
    %22 = arith.mulf %20, %21 : vector<2x16x8xf32>
    %c0_18 = arith.constant 0 : index
    %c0_19 = arith.constant 0 : index
    %c0_20 = arith.constant 0 : index
    %23 = vector.load %arg4[%c0_18, %c0_19, %c0_20] : memref<2x1x8xf32, #tpu.memory_space<vmem>>, vector<2x1x8xf32>
    %cst_21 = arith.constant 0.000000e+00 : f32
    %24 = vector.broadcast %cst_21 : f32 to vector<2x1x8xf32>
    %25 = arith.cmpf one, %23, %24 : vector<2x1x8xf32>
    %cst_22 = arith.constant 0.000000e+00 : f32
    %cst_23 = arith.constant -1.000000e+30 : f32
    %26 = vector.broadcast %cst_22 : f32 to vector<2x1x8xf32>
    %27 = vector.broadcast %cst_23 : f32 to vector<2x1x8xf32>
    %28 = arith.select %25, %26, %27 : vector<2x1x8xi1>, vector<2x1x8xf32>
    %29 = vector.broadcast %28 : vector<2x1x8xf32> to vector<2x16x8xf32>
    %30 = arith.addf %22, %29 : vector<2x16x8xf32>
    %cst_24 = arith.constant dense<0xFF800000> : vector<2x16xf32>
    %31 = vector.multi_reduction <maximumf>, %30, %cst_24 [2] : vector<2x16x8xf32> to vector<2x16xf32>
    %32 = vector.shape_cast %31 : vector<2x16xf32> to vector<2x16x1xf32>
    %33 = vector.broadcast %32 : vector<2x16x1xf32> to vector<2x16x8xf32>
    %34 = arith.subf %30, %33 : vector<2x16x8xf32>
    %35 = math.exp %34 : vector<2x16x8xf32>
    %cst_25 = arith.constant dense<0.000000e+00> : vector<2x16xf32>
    %36 = vector.multi_reduction <add>, %35, %cst_25 [2] : vector<2x16x8xf32> to vector<2x16xf32>
    %37 = vector.shape_cast %36 : vector<2x16xf32> to vector<2x16x1xf32>
    %38 = tpu.reciprocal %37 : vector<2x16x1xf32> -> vector<2x16x1xf32>
    %39 = vector.broadcast %38 : vector<2x16x1xf32> to vector<2x16x8xf32>
    %40 = arith.mulf %35, %39 : vector<2x16x8xf32>
    "tpu.trace_start"() <{level = 10 : i32, message = "blm,bmd->bld"}> : () -> ()
    %cst_26 = arith.constant dense<0.000000e+00> : vector<2x16x32xf32>
    %41 = tpu.matmul %40, %1, %cst_26 {dimension_numbers = #tpu.dot_dimension_numbers<[2], [1], [1], [2], [0, 0, 0, 1, 1, 2], [0], [0]>} : vector<2x16x8xf32>, vector<2x8x32xf32>, vector<2x16x32xf32> -> vector<2x16x32xf32>
    "tpu.trace_stop"() : () -> ()
    %42 = vector.shape_cast %41 : vector<2x16x32xf32> to vector<32x32xf32>
    %c0_27 = arith.constant 0 : index
    %c0_28 = arith.constant 0 : index
    %43 = vector.load %arg9[%c0_27, %c0_28] : memref<32x32xf32, #tpu.memory_space<vmem>>, vector<32x32xf32>
    %cst_29 = arith.constant dense<0.000000e+00> : vector<32x32xf32>
    %44 = tpu.matmul %2, %43, %cst_29 {dimension_numbers = #tpu.dot_dimension_numbers<[1], [0], [0], [1], [0, 0, 1, 1], [], []>} : vector<32x32xf32>, vector<32x32xf32>, vector<32x32xf32> -> vector<32x32xf32>
    %c0_30 = arith.constant 0 : index
    %c0_31 = arith.constant 0 : index
    %45 = vector.load %arg10[%c0_30, %c0_31] : memref<32x32xf32, #tpu.memory_space<vmem>>, vector<32x32xf32>
    %cst_32 = arith.constant dense<0.000000e+00> : vector<32x32xf32>
    %46 = tpu.matmul %42, %45, %cst_32 {dimension_numbers = #tpu.dot_dimension_numbers<[1], [0], [0], [1], [0, 0, 1, 1], [], []>} : vector<32x32xf32>, vector<32x32xf32>, vector<32x32xf32> -> vector<32x32xf32>
    %47 = arith.addf %44, %46 : vector<32x32xf32>
    %c0_33 = arith.constant 0 : index
    %c0_34 = arith.constant 0 : index
    %48 = vector.load %arg11[%c0_33, %c0_34] : memref<1x32xf32, #tpu.memory_space<vmem>>, vector<1x32xf32>
    %49 = vector.broadcast %48 : vector<1x32xf32> to vector<32x32xf32>
    %50 = arith.addf %47, %49 : vector<32x32xf32>
    %51 = arith.negf %50 : vector<32x32xf32>
    %52 = math.exp %51 : vector<32x32xf32>
    %cst_35 = arith.constant 1.000000e+00 : f32
    %53 = vector.broadcast %cst_35 : f32 to vector<32x32xf32>
    %54 = arith.addf %53, %52 : vector<32x32xf32>
    %55 = arith.divf %53, %54 : vector<32x32xf32>
    %56 = math.tanh %50 : vector<32x32xf32>
    %57 = arith.mulf %55, %56 : vector<32x32xf32>
    %58 = vector.shape_cast %57 : vector<32x32xf32> to vector<2x16x32xf32>
    %c0_36 = arith.constant 0 : index
    %c0_37 = arith.constant 0 : index
    %c0_38 = arith.constant 0 : index
    %59 = vector.load %arg12[%c0_36, %c0_37, %c0_38] : memref<2x16x32xf32, #tpu.memory_space<vmem>>, vector<2x16x32xf32>
    tpu.vector_store %arg12[%c0_36, %c0_37, %c0_38], %58 {strides = array<i32>} : memref<2x16x32xf32, #tpu.memory_space<vmem>>, vector<2x16x32xf32>,
    return
  }
  func.func @transform_0(%arg0: i32, %arg1: i32) -> (i32, i32, i32) {
    %c0_i32 = arith.constant 0 : i32
    %c0_i32_0 = arith.constant 0 : i32
    return %arg0, %arg1, %c0_i32 : i32, i32, i32
  }
  func.func @transform_1(%arg0: i32, %arg1: i32) -> (i32, i32, i32) {
    %c0_i32 = arith.constant 0 : i32
    %c0_i32_0 = arith.constant 0 : i32
    %c0_i32_1 = arith.constant 0 : i32
    return %arg0, %c0_i32, %c0_i32_0 : i32, i32, i32
  }
  func.func @transform_2(%arg0: i32, %arg1: i32) -> (i32, i32, i32) {
    %c0_i32 = arith.constant 0 : i32
    %c0_i32_0 = arith.constant 0 : i32
    %c0_i32_1 = arith.constant 0 : i32
    return %arg0, %c0_i32, %c0_i32_0 : i32, i32, i32
  }
  func.func @transform_3(%arg0: i32, %arg1: i32) -> (i32, i32) {
    %c0_i32 = arith.constant 0 : i32
    %c0_i32_0 = arith.constant 0 : i32
    %c0_i32_1 = arith.constant 0 : i32
    return %c0_i32, %c0_i32_0 : i32, i32
  }
  func.func @transform_4(%arg0: i32, %arg1: i32) -> (i32, i32) {
    %c0_i32 = arith.constant 0 : i32
    %c0_i32_0 = arith.constant 0 : i32
    %c0_i32_1 = arith.constant 0 : i32
    return %c0_i32, %c0_i32_0 : i32, i32
  }
  func.func @transform_5(%arg0: i32, %arg1: i32) -> (i32, i32) {
    %c0_i32 = arith.constant 0 : i32
    %c0_i32_0 = arith.constant 0 : i32
    %c0_i32_1 = arith.constant 0 : i32
    return %c0_i32, %c0_i32_0 : i32, i32
  }
  func.func @transform_6(%arg0: i32, %arg1: i32) -> (i32, i32) {
    %c0_i32 = arith.constant 0 : i32
    %c0_i32_0 = arith.constant 0 : i32
    %c0_i32_1 = arith.constant 0 : i32
    return %c0_i32, %c0_i32_0 : i32, i32
  }
  func.func @transform_7(%arg0: i32, %arg1: i32) -> (i32, i32) {
    %c0_i32 = arith.constant 0 : i32
    %c0_i32_0 = arith.constant 0 : i32
    %c0_i32_1 = arith.constant 0 : i32
    return %c0_i32, %c0_i32_0 : i32, i32
  }
  func.func @transform_8(%arg0: i32, %arg1: i32) -> (i32, i32) {
    %c0_i32 = arith.constant 0 : i32
    %c0_i32_0 = arith.constant 0 : i32
    %c0_i32_1 = arith.constant 0 : i32
    return %c0_i32, %c0_i32_0 : i32, i32
  }
  func.func @transform_9(%arg0: i32, %arg1: i32) -> (i32, i32) {
    %c0_i32 = arith.constant 0 : i32
    %c0_i32_0 = arith.constant 0 : i32
    %c0_i32_1 = arith.constant 0 : i32
    return %c0_i32, %c0_i32_0 : i32, i32
  }
  func.func @transform_10(%arg0: i32, %arg1: i32) -> (i32, i32, i32) {
    %c0_i32 = arith.constant 0 : i32
    %c0_i32_0 = arith.constant 0 : i32
    return %arg0, %arg1, %c0_i32 : i32, i32, i32
  }
}

</mosaic_0001>

<bundles_post_ra>
// kernel: tpu_custom_call.1
= control target key start
LH: loop header
LB: loop body
LE: loop exit
PB: predicated region body
PF: predicated region fallthrough
CT: control target
= control target key end

     0   :  { %15 = vsyncpa [#allocation3], 0  ;;  %s1645_s0 = inlined_call_operand.hbm [shape: f32[2,16,32], index: 0, kind: input, shape index: {}]   ;;  %s1646_s1 = inlined_call_operand.hbm [shape: f32[2,8,32], index: 1, kind: input, shape index: {}]   ;;  %s1647_s2 = inlined_call_operand.vmem [shape: f32[2,1,8], index: 2, kind: input, shape index: {}]   ;;  %s1648_s3 = inlined_call_operand.hbm [shape: f32[32,32], index: 3, kind: input, shape index: {}]   ;;  %s1649_s4 = inlined_call_operand.vmem [shape: f32[1,32], index: 4, kind: input, shape index: {}]   ;;  %s1650_s5 = inlined_call_operand.hbm [shape: f32[32,32], index: 5, kind: input, shape index: {}]   ;;  %s1651_s6 = inlined_call_operand.vmem [shape: f32[1,32], index: 6, kind: input, shape index: {}]   ;;  %s1652_s7 = inlined_call_operand.hbm [shape: f32[32,32], index: 7, kind: input, shape index: {}]   ;;  %s1653_s8 = inlined_call_operand.hbm [shape: f32[32,32], index: 8, kind: input, shape index: {}]   ;;  %s1654_s9 = inlined_call_operand.vmem [shape: f32[1,32], index: 9, kind: input, shape index: {}]   ;;  %s1655_s10 = inlined_call_operand.hbm [shape: f32[2,16,32], index: 10, kind: output, shape index: {}]  }
   0x1   :  { %16 = vsyncpa [#allocation6], 0 }
   0x2   :  { %17 = vsyncpa [#allocation9], 0 }
   0x3   :  { %18 = vsyncpa [#allocation12], 0 }
   0x4   :  { %19 = vsyncpa [#allocation4], 0  ;;  %s1385_s13 = smov [#allocation5]   ;;  %s1386_s15 = smov [#allocation8]  }
   0x5   :  { %s37_s14 = sshll.u32 %s1385_s13, 4  ;;  %s65_s16 = sshll.u32 %s1386_s15, 4  ;;  %s38_s14 = int_to_ptr.vmem [resolvable:$true] %s37_s14  ;;  %s1450_s16 = int_to_ptr.vmem [resolvable:$true] %s65_s16 }
   0x6   :  { %s1221_s19 = scalar_lea.hbm %s1646_s1, 256 }
   0x7   :  { %p1222_p0 = scmp.ne.s32.totalorder %s1646_s1, %s1221_s19  ;;  %p1225_p1 = scmp.lt.u32.totalorder %s1221_s19, %s1646_s1 }
   0x9   :  { %p1227_p2 = pnand %p1225_p1, %p1222_p0 }
   0xb   :  { %1230 = shalt.err (!%p1227_p2)
}
   0xc   :  { %s1231_s24 = scalar_lea.vmem %s38_s14, 256  ;;  %p1236_p4 = scmp.lt.s32.totalorder %s38_s14, %s38_s14 }
   0xd   :  { %p1232_p3 = scmp.ne.s32.totalorder %s38_s14, %s1231_s24  ;;  %p1237_p5 = scmp.lt.s32.totalorder %s1231_s24, %s1231_s24 }
   0xf   :  { %p1238_p6 = por %p1237_p5, %p1236_p4 }
  0x11   :  { %p1239_p7 = pnand %p1238_p6, %p1232_p3 }
  0x13   :  { %1242 = shalt.err (!%p1239_p7)
}
  0x14   :  { %s1387_s25 = smov 128   ;;  %s1388_s26 = smov 8  }
  0x15   :  { %43 = dma.hbm_to_vmem [thread:$0]  %s1646_s1, 256, %s38_s14, [#allocation6], %s1387_s25, %s1387_s25, %s1388_s26  }
  0x16   :  { %s1243_s11 = scalar_lea.hbm %s1650_s5, 512 }
  0x17   :  { %p1244_p8 = scmp.ne.s32.totalorder %s1650_s5, %s1243_s11  ;;  %p1247_p9 = scmp.lt.u32.totalorder %s1243_s11, %s1650_s5 }
  0x19   :  { %p1249_p10 = pnand %p1247_p9, %p1244_p8 }
  0x1b   :  { %1252 = shalt.err (!%p1249_p10)
}
  0x1c   :  { %s1253_s18 = scalar_lea.vmem %s1450_s16, 512  ;;  %p1258_p12 = scmp.lt.s32.totalorder %s1450_s16, %s1450_s16 }
  0x1d   :  { %p1254_p11 = scmp.ne.s32.totalorder %s1450_s16, %s1253_s18  ;;  %p1259_p13 = scmp.lt.s32.totalorder %s1253_s18, %s1253_s18 }
  0x1f   :  { %p1260_p0 = por %p1259_p13, %p1258_p12 }
  0x21   :  { %p1261_p1 = pnand %p1260_p0, %p1254_p11 }
  0x23   :  { %1264 = shalt.err (!%p1261_p1)
}
  0x24   :  { %71 = dma.hbm_to_vmem [thread:$0]  %s1650_s5, 512, %s1450_s16, [#allocation9], %s1387_s25, %s1387_s25, %s1388_s26  }
  0x25   :  { %s1389_s19 = smov [#allocation2]   ;;  %s1390_s21 = smov [#allocation7]  }
  0x26   :  { %s25_s20 = sshll.u32 %s1389_s19, 4  ;;  %s51_s22 = sshll.u32 %s1390_s21, 4  ;;  %s26_s20 = int_to_ptr.vmem [resolvable:$true] %s25_s20  ;;  %s1487_s22 = int_to_ptr.vmem [resolvable:$true] %s51_s22 }
  0x27   :  { %s1265_s27 = scalar_lea.hbm %s1645_s0, 512 }
  0x28   :  { %p1266_p2 = scmp.ne.s32.totalorder %s1645_s0, %s1265_s27  ;;  %p1269_p3 = scmp.lt.u32.totalorder %s1265_s27, %s1645_s0 }
  0x2a   :  { %p1271_p4 = pnand %p1269_p3, %p1266_p2 }
  0x2c   :  { %1274 = shalt.err (!%p1271_p4)
}
  0x2d   :  { %s1275_s5 = scalar_lea.vmem %s26_s20, 512  ;;  %p1280_p6 = scmp.lt.s32.totalorder %s26_s20, %s26_s20 }
  0x2e   :  { %p1276_p5 = scmp.ne.s32.totalorder %s26_s20, %s1275_s5  ;;  %p1281_p7 = scmp.lt.s32.totalorder %s1275_s5, %s1275_s5 }
  0x30   :  { %p1282_p8 = por %p1281_p7, %p1280_p6 }
  0x32   :  { %p1283_p9 = pnand %p1282_p8, %p1276_p5 }
  0x34   :  { %1286 = shalt.err (!%p1283_p9)
}
  0x35   :  { %31 = dma.hbm_to_vmem [thread:$0]  %s1645_s0, 512, %s26_s20, [#allocation3], %s1387_s25, %s1387_s25, %s1388_s26  }
  0x36   :  { %s1287_s17 = scalar_lea.hbm %s1648_s3, 512 }
  0x37   :  { %p1288_p10 = scmp.ne.s32.totalorder %s1648_s3, %s1287_s17  ;;  %p1291_p11 = scmp.lt.u32.totalorder %s1287_s17, %s1648_s3 }
  0x39   :  { %p1293_p12 = pnand %p1291_p11, %p1288_p10 }
  0x3b   :  { %1296 = shalt.err (!%p1293_p12)
}
  0x3c   :  { %s1297_s21 = scalar_lea.vmem %s1487_s22, 512  ;;  %p1302_p0 = scmp.lt.s32.totalorder %s1487_s22, %s1487_s22 }
  0x3d   :  { %p1298_p13 = scmp.ne.s32.totalorder %s1487_s22, %s1297_s21  ;;  %p1303_p1 = scmp.lt.s32.totalorder %s1297_s21, %s1297_s21 }
  0x3f   :  { %p1304_p2 = por %p1303_p1, %p1302_p0 }
  0x41   :  { %p1305_p3 = pnand %p1304_p2, %p1298_p13 }
  0x43   :  { %1308 = shalt.err (!%p1305_p3)
}
  0x44   :  { %57 = dma.hbm_to_vmem [thread:$0]  %s1648_s3, 512, %s1487_s22, [#allocation6], %s1387_s25, %s1387_s25, %s1388_s26  }
  0x45   :  { %s1391_s23 = smov [#allocation10]   ;;  %s1392_s27 = smov [#allocation11]  }
  0x46   :  { %s79_s24 = sshll.u32 %s1391_s23, 4  ;;  %s91_s28 = sshll.u32 %s1392_s27, 4  ;;  %s80_s24 = int_to_ptr.vmem [resolvable:$true] %s79_s24  ;;  %s1524_s28 = int_to_ptr.vmem [resolvable:$true] %s91_s28 }
  0x47   :  { %s1309_s11 = scalar_lea.hbm %s1652_s7, 512 }
  0x48   :  { %p1310_p4 = scmp.ne.s32.totalorder %s1652_s7, %s1309_s11  ;;  %p1313_p5 = scmp.lt.u32.totalorder %s1309_s11, %s1652_s7 }
  0x4a   :  { %p1315_p6 = pnand %p1313_p5, %p1310_p4 }
  0x4c   :  { %1318 = shalt.err (!%p1315_p6)
}
  0x4d   :  { %s1319_s3 = scalar_lea.vmem %s80_s24, 512  ;;  %p1324_p8 = scmp.lt.s32.totalorder %s80_s24, %s80_s24 }
  0x4e   :  { %p1320_p7 = scmp.ne.s32.totalorder %s80_s24, %s1319_s3  ;;  %p1325_p9 = scmp.lt.s32.totalorder %s1319_s3, %s1319_s3 }
  0x50   :  { %p1326_p10 = por %p1325_p9, %p1324_p8 }
  0x52   :  { %p1327_p11 = pnand %p1326_p10, %p1320_p7 }
  0x54   :  { %1330 = shalt.err (!%p1327_p11)
}
  0x55   :  { %85 = dma.hbm_to_vmem [thread:$0]  %s1652_s7, 512, %s80_s24, [#allocation9], %s1387_s25, %s1387_s25, %s1388_s26  }
  0x56   :  { %s1331_s1 = scalar_lea.hbm %s1653_s8, 512 }
  0x57   :  { %p1332_p12 = scmp.ne.s32.totalorder %s1653_s8, %s1331_s1  ;;  %p1335_p13 = scmp.lt.u32.totalorder %s1331_s1, %s1653_s8 }
  0x59   :  { %p1337_p0 = pnand %p1335_p13, %p1332_p12 }
  0x5b   :  { %1340 = shalt.err (!%p1337_p0)
}
  0x5c   :  { %s1341_s20 = scalar_lea.vmem %s1524_s28, 512  ;;  %p1346_p2 = scmp.lt.s32.totalorder %s1524_s28, %s1524_s28 }
  0x5d   :  { %p1342_p1 = scmp.ne.s32.totalorder %s1524_s28, %s1341_s20  ;;  %p1347_p3 = scmp.lt.s32.totalorder %s1341_s20, %s1341_s20 }
  0x5f   :  { %p1348_p4 = por %p1347_p3, %p1346_p2 }
  0x61   :  { %p1349_p5 = pnand %p1348_p4, %p1342_p1 }
  0x63   :  { %1352 = shalt.err (!%p1349_p5)
}
  0x64   :  { %97 = dma.hbm_to_vmem [thread:$0]  %s1653_s8, 512, %s1524_s28, [#allocation12], %s1387_s25, %s1387_s25, %s1388_s26  }
  0x65   :  { %1375 = dma.done.wait [#allocation3], 512  }
  0x66   :  { %1376 = vsyncadd [#allocation3], 4294966784 }
  0x67   :  { %1377 = dma.done.wait [#allocation6], 768  }
  0x68   :  { %1378 = vsyncadd [#allocation6], 4294966528 }
  0x69   :  { %1379 = dma.done.wait [#allocation9], 1024  }
  0x6a   :  { %1380 = vsyncadd [#allocation9], 4294966272 }
  0x6b   :  { %1381 = dma.done.wait [#allocation12], 512  }
  0x6c   :  { %1382 = vsyncadd [#allocation12], 4294966784  ;;  %vm135_vm0 = vcmask 261120   ;;  %v124_v0 = vld [vmem:[#allocation7] sm:$0xff]  ;;  %v125_v1 = vld [vmem:[#allocation7 + $0x8] sm:$0xff]  ;;  %v511_v38 = vlaneseq  ;;  %vm525_vm3 = vcmask 64512  }
  0x6d   :  { %v126_v2 = vld [vmem:[#allocation7 + $0x10] sm:$0xff]  ;;  %v1135_v3 = vpack.c.bf16 %v125_v1, %v124_v0  ;;  %v127_v4 = vld [vmem:[#allocation7 + $0x18] sm:$0xff]  ;;  %v237_v7 = vld [vmem:[#allocation8] sm:$0xff]  ;;  %v1393_v43 = vmov -1e+30  }
  0x6e   :  { %v1561_v5 = vld [vmem:[#allocation2] sm:$0xff]  ;;  %v1139_v6 = vpack.c.bf16 %v127_v4, %v126_v2  ;;  %v238_v8 = vld [vmem:[#allocation8 + $0x8] sm:$0xff]  ;;  %v240_v11 = vld [vmem:[#allocation8 + $0x18] sm:$0xff]  ;;  %v512_v40 = vshrl.u32 %v511_v38, 7 }
  0x6f   :  { %1070 = vmatprep.mubr.msk.f32.mxu0 %vm135_vm0, %v1561_v5  ;;  %1136 = vmatprep.subr.bf16.mxu0 %v1135_v3  ;;  %v1143_v9 = vpack.c.bf16 %v238_v8, %v237_v7  ;;  %v239_v10 = vld [vmem:[#allocation8 + $0x10] sm:$0xff]  ;;  %v1565_v12 = vld [vmem:[#allocation2 + $0x8] sm:$0xff]  ;;  %v1567_v13 = vld [vmem:[#allocation2 + $0x10] sm:$0xff] }
  0x70   :  { %1138 = vmatpush3.bf16.msra.mxu0 %v1135_v3  ;;  %v1147_v14 = vpack.c.bf16 %v240_v11, %v239_v10  ;;  %v1573_v15 = vld [vmem:[#allocation2 + $0x18] sm:$0xff]  ;;  %v122_v16 = vld [vmem:[#allocation5] sm:$0xff]  ;;  %v123_v17 = vld [vmem:[#allocation5 + $0x8] sm:$0xff]  ;;  %v513_v42 = vsub.s32 0, %v512_v40 }
  0x71   :  { %1140 = vmatprep.subr.bf16.mxu0 %v1139_v6  ;;  %v989_v18 = vld [vmem:[%s1649_s4] ss:$0 sm:$0xff]  ;;  %v504_v39 = vld [vmem:[%s1647_s2 + $0x1] sm:$0x1] }
  0x72   :  { %v994_v26 = vld [vmem:[%s1651_s6] ss:$0 sm:$0xff]  ;;  %vm506_vm1 = vcmp.ne.f32.partialorder %v504_v39, 0.0 }
  0x73   :  { %v503_v41 = vld [vmem:[%s1647_s2] sm:$0x1]  ;;  %v508_v44 = vsel %vm506_vm1, 0.0, %v1393_v43 }
  0x74   :  { %1142 = vmatpush3.bf16.msra.mxu0 %v1139_v6  ;;  %vm505_vm2 = vcmp.ne.f32.partialorder %v503_v41, 0.0  ;;  %v518_v47 = vrot.slane %v508_v44, %v513_v42 }
  0x75   :  { %1144 = vmatprep.subr.bf16.mxu0 %v1143_v9  ;;  %v507_v45 = vsel %vm505_vm2, 0.0, %v1393_v43  ;;  %v733_v43 = vld [vmem:[#allocation10 + $0x8] sm:$0xff] }
  0x76   :  { %v514_v50 = vrot.slane %v507_v45, %v513_v42  ;;  %v732_v42 = vld [vmem:[#allocation10] sm:$0xff]  ;;  %v734_v45 = vld [vmem:[#allocation10 + $0x10] sm:$0xff] }
  0x77   :  { %1071 = vmatmul.mubr.msk.f32.vlgmr.msra.gmra.mrb[0].mxu0 %vm135_vm0, %v1565_v12  ;;  %v1159_v44 = vpack.c.bf16 %v733_v43, %v732_v42 }
  0x78   :  { %1146 = vmatpush3.bf16.msra.mxu0 %v1143_v9  ;;  %1073 = vmatprep.mubr.msk.f32.mxu0 %vm135_vm0, %v1567_v13 }
  0x79   :  { %1148 = vmatprep.subr.bf16.mxu0 %v1147_v14 }
  0x7b   :  { %1074 = vmatmul.mubr.msk.f32.gmra.mrb[2].mxu0 %vm135_vm0, %v1573_v15 }
  0x7c   :  { %1150 = vmatpush3.bf16.msra.mxu0 %v1147_v14  ;;  %1084 = vmatprep.mubr.msk.f32.mxu0 %vm135_vm0, %v122_v16 }
  0x7f   :  { %1085 = vmatmul.mubr.msk.f32.vlgmr.msra.gmra.mrb[4].mxu0 %vm135_vm0, %v123_v17 }
 0x14a   :  { %v1072_v19 = vpop.f32.mrb[0].mxu0 }
 0x14b   :  { %v214_v20 = vpop.f32.mrb[1].mxu0  ;;  %v220_v34 = vadd.f32 %v1072_v19, %v989_v18 }
 0x14c   :  { %v215_v21 = vadd.f32 %v989_v18, %v214_v20 }
 0x14d   :  { %v234_v37 = vmax.f32 %v220_v34, 0.0  ;;  %v739_v34 = vld [vmem:[#allocation11 + $0x18] sm:$0xff] }
 0x14e   :  { %v233_v22 = vmax.f32 %v215_v21, 0.0  ;;  %v1075_v23 = vpop.f32.mrb[2].mxu0 }
 0x14f   :  { %v224_v24 = vpop.f32.mrb[3].mxu0  ;;  %v230_v32 = vadd.f32 %v1075_v23, %v989_v18 }
 0x150   :  { %v225_v25 = vadd.f32 %v989_v18, %v224_v24  ;;  %1089 = vmatprep.mubr.msk.f32.mxu1 %vm135_vm0, %v233_v22  ;;  %v736_v24 = vld [vmem:[#allocation11] sm:$0xff] }
 0x151   :  { %v236_v36 = vmax.f32 %v230_v32, 0.0 }
 0x152   :  { %v235_v27 = vmax.f32 %v225_v25, 0.0  ;;  %v1086_v28 = vpop.f32.mrb[4].mxu0  ;;  %v737_v25 = vld [vmem:[#allocation11 + $0x8] sm:$0xff] }
 0x153   :  { %v326_v29 = vadd.f32 %v1086_v28, %v994_v26  ;;  %v320_v30 = vpop.f32.mrb[5].mxu0 }
 0x154   :  { %v321_v31 = vadd.f32 %v994_v26, %v320_v30  ;;  %1094 = vmatprep.mubr.msk.f32.mxu0 %vm135_vm0, %v235_v27  ;;  %v1151_v26 = vpack.c.bf16 %v737_v25, %v736_v24 }
 0x155   :  { %v330_v33 = vmax.f32 %v326_v29, 0.0 }
 0x156   :  { %v329_v35 = vmax.f32 %v321_v31, 0.0 }
 0x157   :  { %1092 = vmatprep.subr.msk.mxu0 %vm135_vm0, %v330_v33 }
 0x158   :  { %1087 = vmatprep.subr.msk.mxu1 %vm135_vm0, %v329_v35  ;;  %1093 = vmatpush3.xpose.msk.msra.mxu0 %vm135_vm0, %v330_v33  ;;  %v738_v33 = vld [vmem:[#allocation11 + $0x10] sm:$0xff] }
 0x159   :  { %1088 = vmatpush3.xpose.msk.msra.mxu1 %vm135_vm0, %v329_v35  ;;  %1102 = vmatprep.subr.mxu0 %v123_v17  ;;  %v1155_v38 = vpack.c.bf16 %v739_v34, %v738_v33 }
 0x15a   :  { %1097 = vmatprep.subr.mxu1 %v122_v16 }
 0x15b   :  { %1095 = vmatmul.mubr.msk.f32.vlgmr.msra.gmra.mrb[6].mxu0 %vm135_vm0, %v236_v36 }
 0x15c   :  { %1090 = vmatmul.mubr.msk.f32.vlgmr.msra.gmra.mrb[0].mxu1 %vm135_vm0, %v234_v37  ;;  %1103 = vmatpush3.msra.mxu0 %v123_v17 }
 0x15d   :  { %1098 = vmatpush3.msra.mxu1 %v122_v16 }
 0x15e   :  { %1152 = vmatprep.subr.bf16.mxu1 %v1151_v26 }
 0x22e   :  { %v1096_v46 = vpop.f32.mrb[6].mxu0 }
 0x22f   :  { %v1091_v48 = vpop.f32.mrb[0].mxu1  ;;  %v490_v49 = vpop.f32.mrb[7].mxu0  ;;  %v502_v51 = vmul.f32 0.17677669, %v1096_v46  ;;  %v735_v46 = vld [vmem:[#allocation10 + $0x18] sm:$0xff] }
 0x230   :  { %v501_v52 = vmul.f32 0.17677669, %v490_v49  ;;  %v406_v53 = vpop.f32.mrb[1].mxu1  ;;  %v500_v54 = vmul.f32 0.17677669, %v1091_v48  ;;  %v1163_v49 = vpack.c.bf16 %v735_v46, %v734_v45 }
 0x231   :  { %v499_v55 = vmul.f32 0.17677669, %v406_v53  ;;  %v524_v59 = vadd.f32 %v518_v47, %v502_v51 }
 0x232   :  { %v523_v56 = vadd.f32 %v518_v47, %v501_v52  ;;  %v522_v61 = vadd.f32 %v514_v50, %v500_v54  ;;  %v1015_v52 = vld [vmem:[%s1654_s9] ss:$0 sm:$0xff]  ;;  %s1394_s9 = smov [#allocation13]  }
 0x233   :  { %v521_v57 = vadd.f32 %v514_v50, %v499_v55  ;;  %v535_v62 = vsel %vm525_vm3, %v524_v59, -inf  ;;  %s974_s5 = sshll.u32 %s1394_s9, 4  ;;  %s975_s5 = int_to_ptr.vmem [resolvable:$true] %s974_s5 }
 0x234   :  { %v532_v58 = vsel %vm525_vm3, %v523_v56, -inf  ;;  %v529_v63 = vsel %vm525_vm3, %v522_v61, -inf  ;;  %s1353_s16 = scalar_lea.vmem %s975_s5, 512  ;;  %p1358_p7 = scmp.lt.s32.totalorder %s975_s5, %s975_s5 }
 0x235   :  { %533 = vmax.xlane.f32.xlu1 %v532_v58  ;;  %v526_v60 = vsel %vm525_vm3, %v521_v57, -inf  ;;  %p1354_p6 = scmp.ne.s32.totalorder %s975_s5, %s1353_s16  ;;  %p1359_p8 = scmp.lt.s32.totalorder %s1353_s16, %s1353_s16 }
 0x236   :  { %527 = vmax.xlane.f32.xlu0 %v526_v60 }
 0x237   :  { %p1360_p9 = por %p1359_p8, %p1358_p7 }
 0x239   :  { %536 = vmax.xlane.f32.xlu1 %v535_v62  ;;  %p1361_p10 = pnand %p1360_p9, %p1354_p6 }
 0x23a   :  { %530 = vmax.xlane.f32.xlu0 %v529_v63 }
 0x2c2   :  { %v534_v0 = vpop.xlane.xlu1 %533 }
 0x2c3   :  { %v540_v1 = vsub.f32 %v523_v56, %v534_v0  ;;  %v528_v2 = vpop.xlane.xlu0 %527 }
 0x2c4   :  { %v538_v3 = vsub.f32 %v521_v57, %v528_v2 }
 0x2c5   :  { %v546_v4 = vmul.f32 1.442695, %v540_v1 }
 0x2c6   :  { %v542_v6 = vmul.f32 1.442695, %v538_v3  ;;  %v537_v7 = vpop.xlane.xlu1 %536 }
 0x2c7   :  { %v541_v8 = vsub.f32 %v524_v59, %v537_v7  ;;  %v531_v9 = vpop.xlane.xlu0 %530 }
 0x2c8   :  { %1181 = vpow2.f32 %v542_v6  ;;  %v539_v10 = vsub.f32 %v522_v61, %v531_v9 }
 0x2c9   :  { %1183 = vpow2.f32 %v546_v4  ;;  %v548_v11 = vmul.f32 1.442695, %v541_v8 }
 0x2ca   :  { %v544_v14 = vmul.f32 1.442695, %v539_v10 }
 0x2cc   :  { %1185 = vpow2.f32 %v544_v14 }
 0x2cd   :  { %1187 = vpow2.f32 %v548_v11 }
 0x2d2   :  { %v1182_v16 = vpop.eup %1181 }
 0x2d3   :  { %v550_v17 = vsel %vm525_vm3, %v1182_v16, 0.0  ;;  %v1184_v18 = vpop.eup %1183 }
 0x2d4   :  { %551 = vadd.xlane.f32.xlu0 %v550_v17  ;;  %v556_v20 = vsel %vm525_vm3, %v1184_v18, 0.0 }
 0x2d6   :  { %v1186_v19 = vpop.eup %1185 }
 0x2d7   :  { %v553_v21 = vsel %vm525_vm3, %v1186_v19, 0.0  ;;  %v1188_v22 = vpop.eup %1187 }
 0x2d8   :  { %557 = vadd.xlane.f32.xlu0 %v556_v20  ;;  %554 = vadd.xlane.f32.xlu1 %v553_v21  ;;  %v559_v23 = vsel %vm525_vm3, %v1188_v22, 0.0 }
 0x2dc   :  { %560 = vadd.xlane.f32.xlu1 %v559_v23 }
 0x361   :  { %v552_v27 = vpop.xlane.xlu0 %551 }
 0x362   :  { %1189 = vrcp.f32 %v552_v27 }
 0x365   :  { %v555_v28 = vpop.xlane.xlu1 %554  ;;  %v558_v29 = vpop.xlane.xlu0 %557 }
 0x366   :  { %1191 = vrcp.f32 %v555_v28 }
 0x367   :  { %1193 = vrcp.f32 %v558_v29 }
 0x369   :  { %v561_v30 = vpop.xlane.xlu1 %560 }
 0x36a   :  { %1195 = vrcp.f32 %v561_v30 }
 0x36c   :  { %v1190_v31 = vpop.eup %1189 }
 0x36d   :  { %v566_v32 = vmul.f32 %v1190_v31, %v1182_v16 }
 0x36f   :  { %1099 = vmatprep.mubr.msk.f32.mxu1 %vm525_vm3, %v566_v32 }
 0x370   :  { %v1192_v35 = vpop.eup %1191 }
 0x371   :  { %v1194_v36 = vpop.eup %1193  ;;  %v567_v37 = vmul.f32 %v1192_v35, %v1186_v19 }
 0x372   :  { %v568_v39 = vmul.f32 %v1194_v36, %v1184_v18 }
 0x373   :  { %1100 = vmatmul.mubr.msk.f32.vlgmr.msra.gmra.mrb[2].mxu1 %vm525_vm3, %v567_v37 }
 0x374   :  { %v1196_v40 = vpop.eup %1195  ;;  %1104 = vmatprep.mubr.msk.f32.mxu0 %vm525_vm3, %v568_v39  ;;  %1154 = vmatpush3.bf16.msra.mxu1 %v1151_v26 }
 0x375   :  { %v569_v41 = vmul.f32 %v1196_v40, %v1188_v22  ;;  %1156 = vmatprep.subr.bf16.mxu1 %v1155_v38 }
 0x377   :  { %1105 = vmatmul.mubr.msk.f32.vlgmr.msra.gmra.mrb[8].mxu0 %vm525_vm3, %v569_v41 }
 0x378   :  { %1158 = vmatpush3.bf16.msra.mxu1 %v1155_v38 }
 0x379   :  { %1160 = vmatprep.subr.bf16.mxu1 %v1159_v44 }
 0x446   :  { %v1101_v47 = vpop.f32.mrb[2].mxu1 }
 0x447   :  { %v642_v48 = vpop.f32.mrb[3].mxu1 }
 0x448   :  { %1115 = vmatprep.mubr.msk.f32.mxu1 %vm135_vm0, %v642_v48 }
 0x449   :  { %1116 = vmatmul.mubr.msk.f32.vlgmr.msra.gmra.mrb[4].mxu1 %vm135_vm0, %v1101_v47 }
 0x44a   :  { %v1106_v50 = vpop.f32.mrb[8].mxu0  ;;  %1162 = vmatpush3.bf16.msra.mxu1 %v1159_v44 }
 0x44b   :  { %v723_v51 = vpop.f32.mrb[9].mxu0  ;;  %1164 = vmatprep.subr.bf16.mxu1 %v1163_v49 }
 0x44c   :  { %1118 = vmatprep.mubr.msk.f32.mxu1 %vm135_vm0, %v723_v51 }
 0x44d   :  { %1119 = vmatmul.mubr.msk.f32.gmra.mrb[6].mxu1 %vm135_vm0, %v1106_v50 }
 0x44e   :  { %1166 = vmatpush3.bf16.msra.mxu1 %v1163_v49  ;;  %1129 = vmatprep.mubr.msk.f32.mxu1 %vm135_vm0, %v1561_v5 }
 0x451   :  { %1130 = vmatmul.mubr.msk.f32.vlgmr.msra.gmra.mrb[4].mxu1 %vm135_vm0, %v1565_v12 }
 0x452   :  { %1132 = vmatprep.mubr.msk.f32.mxu1 %vm135_vm0, %v1567_v13 }
 0x455   :  { %1133 = vmatmul.mubr.msk.f32.gmra.mrb[6].mxu1 %vm135_vm0, %v1573_v15 }
 0x524   :  { %v1131_v53 = vpop.f32.mrb[4].mxu1 }
 0x525   :  { %v930_v54 = vadd.f32 %v1131_v53, %v1015_v52  ;;  %v903_v55 = vpop.f32.mrb[5].mxu1 }
 0x526   :  { %v929_v56 = vadd.f32 %v1015_v52, %v903_v55 }
 0x527   :  { %v1017_v57 = vmul.f32 -1.442695, %v930_v54 }
 0x528   :  { %v1016_v58 = vmul.f32 -1.442695, %v929_v56  ;;  %v1134_v5 = vpop.f32.mrb[6].mxu1 }
 0x529   :  { %1197 = vpow2.f32 %v1017_v57  ;;  %v932_v59 = vadd.f32 %v1134_v5, %v1015_v52  ;;  %v913_v12 = vpop.f32.mrb[7].mxu1 }
 0x52a   :  { %1199 = vpow2.f32 %v1016_v58  ;;  %v931_v60 = vadd.f32 %v1015_v52, %v913_v12 }
 0x52b   :  { %v1019_v13 = vmul.f32 -1.442695, %v932_v59 }
 0x52c   :  { %v1018_v61 = vmul.f32 -1.442695, %v931_v60 }
 0x52d   :  { %1201 = vpow2.f32 %v1019_v13 }
 0x52e   :  { %1203 = vpow2.f32 %v1018_v61 }
 0x52f   :  { %1205 = vtanh.f32 %v930_v54 }
 0x530   :  { %1207 = vtanh.f32 %v929_v56 }
 0x533   :  { %v1198_v15 = vpop.eup %1197 }
 0x534   :  { %v1200_v62 = vpop.eup %1199  ;;  %v946_v63 = vadd.f32 1.0, %v1198_v15 }
 0x535   :  { %v945_v0 = vadd.f32 1.0, %v1200_v62 }
 0x536   :  { %1209 = vrcp.f32 %v946_v63 }
 0x537   :  { %v1202_v1 = vpop.eup %1201  ;;  %1211 = vrcp.f32 %v945_v0 }
 0x538   :  { %v1204_v2 = vpop.eup %1203  ;;  %v948_v3 = vadd.f32 1.0, %v1202_v1  ;;  %1213 = vtanh.f32 %v932_v59 }
 0x539   :  { %v947_v4 = vadd.f32 1.0, %v1204_v2  ;;  %1215 = vtanh.f32 %v931_v60  ;;  %v1206_v6 = vpop.eup %1205 }
 0x53a   :  { %1217 = vrcp.f32 %v948_v3  ;;  %v1208_v7 = vpop.eup %1207 }
 0x53b   :  { %1219 = vrcp.f32 %v947_v4 }
 0x540   :  { %v1210_v8 = vpop.eup %1209 }
 0x541   :  { %v1212_v9 = vpop.eup %1211  ;;  %v962_v10 = vmul.f32 %v1210_v8, %v1206_v6 }
 0x542   :  { %v1214_v11 = vpop.eup %1213  ;;  %v961_v14 = vmul.f32 %v1212_v9, %v1208_v7 }
 0x543   :  { %v1216_v16 = vpop.eup %1215  ;;  %966 = vst.msk [vmem:[#allocation13 + $0x8] sm:$0xff] %vm135_vm0, %v962_v10 }
 0x544   :  { %v1218_v17 = vpop.eup %1217  ;;  %965 = vst.msk [vmem:[#allocation13] sm:$0xff] %vm135_vm0, %v961_v14 }
 0x545   :  { %v1220_v18 = vpop.eup %1219  ;;  %v964_v19 = vmul.f32 %v1218_v17, %v1214_v11 }
 0x546   :  { %v963_v20 = vmul.f32 %v1220_v18, %v1216_v16 }
 0x547   :  { %968 = vst.msk [vmem:[#allocation13 + $0x18] sm:$0xff] %vm135_vm0, %v964_v19 }
 0x548   :  { %967 = vst.msk [vmem:[#allocation13 + $0x10] sm:$0xff] %vm135_vm0, %v963_v20 }
 0x549   :  { %1364 = shalt.err (!%p1361_p10)
}
 0x54a   :  { %s1365_s3 = scalar_lea.hbm %s1655_s10, 512 }
 0x54b   :  { %p1366_p11 = scmp.ne.s32.totalorder %s1655_s10, %s1365_s3  ;;  %p1369_p12 = scmp.lt.u32.totalorder %s1365_s3, %s1655_s10 }
 0x54d   :  { %p1371_p13 = pnand %p1369_p12, %p1366_p11 }
 0x54f   :  { %1374 = shalt.err (!%p1371_p13)
}
 0x550   :  { %980 = dma.vmem_to_hbm [thread:$0]  %s975_s5, 512, %s1655_s10, [#allocation4], %s1387_s25, %s1387_s25, %s1388_s26  }
 0x551   :  { %1383 = dma.done.wait [#allocation4], 512  }
 0x552   :  { %1384 = vsyncadd [#allocation4], 4294966784 }
 0x553   :  { %984 = vsyncpa [#allocation3], 1 }
 0x554   :  { %985 = vsyncpa [#allocation6], 1 }
 0x555   :  { %986 = vsyncpa [#allocation9], 1 }
 0x556   :  { %987 = vsyncpa [#allocation12], 1 }
 0x557   :  { %988 = vsyncpa [#allocation4], 1 }

// kernel: tpu_custom_call.1
= control target key start
LH: loop header
LB: loop body
LE: loop exit
PB: predicated region body
PF: predicated region fallthrough
CT: control target
= control target key end

     0   :  { %15 = vsyncpa [#allocation3], 0  ;;  %s1645_s0 = inlined_call_operand.hbm [shape: f32[2,16,32], index: 0, kind: input, shape index: {}]   ;;  %s1646_s1 = inlined_call_operand.hbm [shape: f32[2,8,32], index: 1, kind: input, shape index: {}]   ;;  %s1647_s2 = inlined_call_operand.vmem [shape: f32[2,1,8], index: 2, kind: input, shape index: {}]   ;;  %s1648_s3 = inlined_call_operand.hbm [shape: f32[32,32], index: 3, kind: input, shape index: {}]   ;;  %s1649_s4 = inlined_call_operand.vmem [shape: f32[1,32], index: 4, kind: input, shape index: {}]   ;;  %s1650_s5 = inlined_call_operand.hbm [shape: f32[32,32], index: 5, kind: input, shape index: {}]   ;;  %s1651_s6 = inlined_call_operand.vmem [shape: f32[1,32], index: 6, kind: input, shape index: {}]   ;;  %s1652_s7 = inlined_call_operand.hbm [shape: f32[32,32], index: 7, kind: input, shape index: {}]   ;;  %s1653_s8 = inlined_call_operand.hbm [shape: f32[32,32], index: 8, kind: input, shape index: {}]   ;;  %s1654_s9 = inlined_call_operand.vmem [shape: f32[1,32], index: 9, kind: input, shape index: {}]   ;;  %s1655_s10 = inlined_call_operand.hbm [shape: f32[2,16,32], index: 10, kind: output, shape index: {}]  }
   0x1   :  { %16 = vsyncpa [#allocation6], 0 }
   0x2   :  { %17 = vsyncpa [#allocation9], 0 }
   0x3   :  { %18 = vsyncpa [#allocation12], 0 }
   0x4   :  { %19 = vsyncpa [#allocation4], 0  ;;  %s1385_s13 = smov [#allocation5]   ;;  %s1386_s15 = smov [#allocation8]  }
   0x5   :  { %s37_s14 = sshll.u32 %s1385_s13, 4  ;;  %s65_s16 = sshll.u32 %s1386_s15, 4  ;;  %s38_s14 = int_to_ptr.vmem [resolvable:$true] %s37_s14  ;;  %s1450_s16 = int_to_ptr.vmem [resolvable:$true] %s65_s16 }
   0x6   :  { %s1221_s19 = scalar_lea.hbm %s1646_s1, 256 }
   0x7   :  { %p1222_p0 = scmp.ne.s32.totalorder %s1646_s1, %s1221_s19  ;;  %p1225_p1 = scmp.lt.u32.totalorder %s1221_s19, %s1646_s1 }
   0x9   :  { %p1227_p2 = pnand %p1225_p1, %p1222_p0 }
   0xb   :  { %1230 = shalt.err (!%p1227_p2)
}
   0xc   :  { %s1231_s24 = scalar_lea.vmem %s38_s14, 256  ;;  %p1236_p4 = scmp.lt.s32.totalorder %s38_s14, %s38_s14 }
   0xd   :  { %p1232_p3 = scmp.ne.s32.totalorder %s38_s14, %s1231_s24  ;;  %p1237_p5 = scmp.lt.s32.totalorder %s1231_s24, %s1231_s24 }
   0xf   :  { %p1238_p6 = por %p1237_p5, %p1236_p4 }
  0x11   :  { %p1239_p7 = pnand %p1238_p6, %p1232_p3 }
  0x13   :  { %1242 = shalt.err (!%p1239_p7)
}
  0x14   :  { %s1387_s25 = smov 128   ;;  %s1388_s26 = smov 8  }
  0x15   :  { %43 = dma.hbm_to_vmem [thread:$0]  %s1646_s1, 256, %s38_s14, [#allocation6], %s1387_s25, %s1387_s25, %s1388_s26  }
  0x16   :  { %s1243_s11 = scalar_lea.hbm %s1650_s5, 512 }
  0x17   :  { %p1244_p8 = scmp.ne.s32.totalorder %s1650_s5, %s1243_s11  ;;  %p1247_p9 = scmp.lt.u32.totalorder %s1243_s11, %s1650_s5 }
  0x19   :  { %p1249_p10 = pnand %p1247_p9, %p1244_p8 }
  0x1b   :  { %1252 = shalt.err (!%p1249_p10)
}
  0x1c   :  { %s1253_s18 = scalar_lea.vmem %s1450_s16, 512  ;;  %p1258_p12 = scmp.lt.s32.totalorder %s1450_s16, %s1450_s16 }
  0x1d   :  { %p1254_p11 = scmp.ne.s32.totalorder %s1450_s16, %s1253_s18  ;;  %p1259_p13 = scmp.lt.s32.totalorder %s1253_s18, %s1253_s18 }
  0x1f   :  { %p1260_p0 = por %p1259_p13, %p1258_p12 }
  0x21   :  { %p1261_p1 = pnand %p1260_p0, %p1254_p11 }
  0x23   :  { %1264 = shalt.err (!%p1261_p1)
}
  0x24   :  { %71 = dma.hbm_to_vmem [thread:$0]  %s1650_s5, 512, %s1450_s16, [#allocation9], %s1387_s25, %s1387_s25, %s1388_s26  }
  0x25   :  { %s1389_s19 = smov [#allocation2]   ;;  %s1390_s21 = smov [#allocation7]  }
  0x26   :  { %s25_s20 = sshll.u32 %s1389_s19, 4  ;;  %s51_s22 = sshll.u32 %s1390_s21, 4  ;;  %s26_s20 = int_to_ptr.vmem [resolvable:$true] %s25_s20  ;;  %s1487_s22 = int_to_ptr.vmem [resolvable:$true] %s51_s22 }
  0x27   :  { %s1265_s27 = scalar_lea.hbm %s1645_s0, 512 }
  0x28   :  { %p1266_p2 = scmp.ne.s32.totalorder %s1645_s0, %s1265_s27  ;;  %p1269_p3 = scmp.lt.u32.totalorder %s1265_s27, %s1645_s0 }
  0x2a   :  { %p1271_p4 = pnand %p1269_p3, %p1266_p2 }
  0x2c   :  { %1274 = shalt.err (!%p1271_p4)
}
  0x2d   :  { %s1275_s5 = scalar_lea.vmem %s26_s20, 512  ;;  %p1280_p6 = scmp.lt.s32.totalorder %s26_s20, %s26_s20 }
  0x2e   :  { %p1276_p5 = scmp.ne.s32.totalorder %s26_s20, %s1275_s5  ;;  %p1281_p7 = scmp.lt.s32.totalorder %s1275_s5, %s1275_s5 }
  0x30   :  { %p1282_p8 = por %p1281_p7, %p1280_p6 }
  0x32   :  { %p1283_p9 = pnand %p1282_p8, %p1276_p5 }
  0x34   :  { %1286 = shalt.err (!%p1283_p9)
}
  0x35   :  { %31 = dma.hbm_to_vmem [thread:$0]  %s1645_s0, 512, %s26_s20, [#allocation3], %s1387_s25, %s1387_s25, %s1388_s26  }
  0x36   :  { %s1287_s17 = scalar_lea.hbm %s1648_s3, 512 }
  0x37   :  { %p1288_p10 = scmp.ne.s32.totalorder %s1648_s3, %s1287_s17  ;;  %p1291_p11 = scmp.lt.u32.totalorder %s1287_s17, %s1648_s3 }
  0x39   :  { %p1293_p12 = pnand %p1291_p11, %p1288_p10 }
  0x3b   :  { %1296 = shalt.err (!%p1293_p12)
}
  0x3c   :  { %s1297_s21 = scalar_lea.vmem %s1487_s22, 512  ;;  %p1302_p0 = scmp.lt.s32.totalorder %s1487_s22, %s1487_s22 }
  0x3d   :  { %p1298_p13 = scmp.ne.s32.totalorder %s1487_s22, %s1297_s21  ;;  %p1303_p1 = scmp.lt.s32.totalorder %s1297_s21, %s1297_s21 }
  0x3f   :  { %p1304_p2 = por %p1303_p1, %p1302_p0 }
  0x41   :  { %p1305_p3 = pnand %p1304_p2, %p1298_p13 }
  0x43   :  { %1308 = shalt.err (!%p1305_p3)
}
  0x44   :  { %57 = dma.hbm_to_vmem [thread:$0]  %s1648_s3, 512, %s1487_s22, [#allocation6], %s1387_s25, %s1387_s25, %s1388_s26  }
  0x45   :  { %s1391_s23 = smov [#allocation10]   ;;  %s1392_s27 = smov [#allocation11]  }
  0x46   :  { %s79_s24 = sshll.u32 %s1391_s23, 4  ;;  %s91_s28 = sshll.u32 %s1392_s27, 4  ;;  %s80_s24 = int_to_ptr.vmem [resolvable:$true] %s79_s24  ;;  %s1524_s28 = int_to_ptr.vmem [resolvable:$true] %s91_s28 }
  0x47   :  { %s1309_s11 = scalar_lea.hbm %s1652_s7, 512 }
  0x48   :  { %p1310_p4 = scmp.ne.s32.totalorder %s1652_s7, %s1309_s11  ;;  %p1313_p5 = scmp.lt.u32.totalorder %s1309_s11, %s1652_s7 }
  0x4a   :  { %p1315_p6 = pnand %p1313_p5, %p1310_p4 }
  0x4c   :  { %1318 = shalt.err (!%p1315_p6)
}
  0x4d   :  { %s1319_s3 = scalar_lea.vmem %s80_s24, 512  ;;  %p1324_p8 = scmp.lt.s32.totalorder %s80_s24, %s80_s24 }
  0x4e   :  { %p1320_p7 = scmp.ne.s32.totalorder %s80_s24, %s1319_s3  ;;  %p1325_p9 = scmp.lt.s32.totalorder %s1319_s3, %s1319_s3 }
  0x50   :  { %p1326_p10 = por %p1325_p9, %p1324_p8 }
  0x52   :  { %p1327_p11 = pnand %p1326_p10, %p1320_p7 }
  0x54   :  { %1330 = shalt.err (!%p1327_p11)
}
  0x55   :  { %85 = dma.hbm_to_vmem [thread:$0]  %s1652_s7, 512, %s80_s24, [#allocation9], %s1387_s25, %s1387_s25, %s1388_s26  }
  0x56   :  { %s1331_s1 = scalar_lea.hbm %s1653_s8, 512 }
  0x57   :  { %p1332_p12 = scmp.ne.s32.totalorder %s1653_s8, %s1331_s1  ;;  %p1335_p13 = scmp.lt.u32.totalorder %s1331_s1, %s1653_s8 }
  0x59   :  { %p1337_p0 = pnand %p1335_p13, %p1332_p12 }
  0x5b   :  { %1340 = shalt.err (!%p1337_p0)
}
  0x5c   :  { %s1341_s20 = scalar_lea.vmem %s1524_s28, 512  ;;  %p1346_p2 = scmp.lt.s32.totalorder %s1524_s28, %s1524_s28 }
  0x5d   :  { %p1342_p1 = scmp.ne.s32.totalorder %s1524_s28, %s1341_s20  ;;  %p1347_p3 = scmp.lt.s32.totalorder %s1341_s20, %s1341_s20 }
  0x5f   :  { %p1348_p4 = por %p1347_p3, %p1346_p2 }
  0x61   :  { %p1349_p5 = pnand %p1348_p4, %p1342_p1 }
  0x63   :  { %1352 = shalt.err (!%p1349_p5)
}
  0x64   :  { %97 = dma.hbm_to_vmem [thread:$0]  %s1653_s8, 512, %s1524_s28, [#allocation12], %s1387_s25, %s1387_s25, %s1388_s26  }
  0x65   :  { %1375 = dma.done.wait [#allocation3], 512  }
  0x66   :  { %1376 = vsyncadd [#allocation3], 4294966784 }
  0x67   :  { %1377 = dma.done.wait [#allocation6], 768  }
  0x68   :  { %1378 = vsyncadd [#allocation6], 4294966528 }
  0x69   :  { %1379 = dma.done.wait [#allocation9], 1024  }
  0x6a   :  { %1380 = vsyncadd [#allocation9], 4294966272 }
  0x6b   :  { %1381 = dma.done.wait [#allocation12], 512  }
  0x6c   :  { %1382 = vsyncadd [#allocation12], 4294966784  ;;  %vm135_vm0 = vcmask 261120   ;;  %v124_v0 = vld [vmem:[#allocation7] sm:$0xff]  ;;  %v125_v1 = vld [vmem:[#allocation7 + $0x8] sm:$0xff]  ;;  %v511_v38 = vlaneseq  ;;  %vm525_vm3 = vcmask 64512  }
  0x6d   :  { %v126_v2 = vld [vmem:[#allocation7 + $0x10] sm:$0xff]  ;;  %v1135_v3 = vpack.c.bf16 %v125_v1, %v124_v0  ;;  %v127_v4 = vld [vmem:[#allocation7 + $0x18] sm:$0xff]  ;;  %v237_v7 = vld [vmem:[#allocation8] sm:$0xff]  ;;  %v1393_v43 = vmov -1e+30  }
  0x6e   :  { %v1561_v5 = vld [vmem:[#allocation2] sm:$0xff]  ;;  %v1139_v6 = vpack.c.bf16 %v127_v4, %v126_v2  ;;  %v238_v8 = vld [vmem:[#allocation8 + $0x8] sm:$0xff]  ;;  %v240_v11 = vld [vmem:[#allocation8 + $0x18] sm:$0xff]  ;;  %v512_v40 = vshrl.u32 %v511_v38, 7 }
  0x6f   :  { %1070 = vmatprep.mubr.msk.f32.mxu0 %vm135_vm0, %v1561_v5  ;;  %1136 = vmatprep.subr.bf16.mxu0 %v1135_v3  ;;  %v1143_v9 = vpack.c.bf16 %v238_v8, %v237_v7  ;;  %v239_v10 = vld [vmem:[#allocation8 + $0x10] sm:$0xff]  ;;  %v1565_v12 = vld [vmem:[#allocation2 + $0x8] sm:$0xff]  ;;  %v1567_v13 = vld [vmem:[#allocation2 + $0x10] sm:$0xff] }
  0x70   :  { %1138 = vmatpush3.bf16.msra.mxu0 %v1135_v3  ;;  %v1147_v14 = vpack.c.bf16 %v240_v11, %v239_v10  ;;  %v1573_v15 = vld [vmem:[#allocation2 + $0x18] sm:$0xff]  ;;  %v122_v16 = vld [vmem:[#allocation5] sm:$0xff]  ;;  %v123_v17 = vld [vmem:[#allocation5 + $0x8] sm:$0xff]  ;;  %v513_v42 = vsub.s32 0, %v512_v40 }
  0x71   :  { %1140 = vmatprep.subr.bf16.mxu0 %v1139_v6  ;;  %v989_v18 = vld [vmem:[%s1649_s4] ss:$0 sm:$0xff]  ;;  %v504_v39 = vld [vmem:[%s1647_s2 + $0x1] sm:$0x1] }
  0x72   :  { %v994_v26 = vld [vmem:[%s1651_s6] ss:$0 sm:$0xff]  ;;  %vm506_vm1 = vcmp.ne.f32.partialorder %v504_v39, 0.0 }
  0x73   :  { %v503_v41 = vld [vmem:[%s1647_s2] sm:$0x1]  ;;  %v508_v44 = vsel %vm506_vm1, 0.0, %v1393_v43 }
  0x74   :  { %1142 = vmatpush3.bf16.msra.mxu0 %v1139_v6  ;;  %vm505_vm2 = vcmp.ne.f32.partialorder %v503_v41, 0.0  ;;  %v518_v47 = vrot.slane %v508_v44, %v513_v42 }
  0x75   :  { %1144 = vmatprep.subr.bf16.mxu0 %v1143_v9  ;;  %v507_v45 = vsel %vm505_vm2, 0.0, %v1393_v43  ;;  %v733_v43 = vld [vmem:[#allocation10 + $0x8] sm:$0xff] }
  0x76   :  { %v514_v50 = vrot.slane %v507_v45, %v513_v42  ;;  %v732_v42 = vld [vmem:[#allocation10] sm:$0xff]  ;;  %v734_v45 = vld [vmem:[#allocation10 + $0x10] sm:$0xff] }
  0x77   :  { %1071 = vmatmul.mubr.msk.f32.vlgmr.msra.gmra.mrb[0].mxu0 %vm135_vm0, %v1565_v12  ;;  %v1159_v44 = vpack.c.bf16 %v733_v43, %v732_v42 }
  0x78   :  { %1146 = vmatpush3.bf16.msra.mxu0 %v1143_v9  ;;  %1073 = vmatprep.mubr.msk.f32.mxu0 %vm135_vm0, %v1567_v13 }
  0x79   :  { %1148 = vmatprep.subr.bf16.mxu0 %v1147_v14 }
  0x7b   :  { %1074 = vmatmul.mubr.msk.f32.gmra.mrb[2].mxu0 %vm135_vm0, %v1573_v15 }
  0x7c   :  { %1150 = vmatpush3.bf16.msra.mxu0 %v1147_v14  ;;  %1084 = vmatprep.mubr.msk.f32.mxu0 %vm135_vm0, %v122_v16 }
  0x7f   :  { %1085 = vmatmul.mubr.msk.f32.vlgmr.msra.gmra.mrb[4].mxu0 %vm135_vm0, %v123_v17 }
 0x14a   :  { %v1072_v19 = vpop.f32.mrb[0].mxu0 }
 0x14b   :  { %v214_v20 = vpop.f32.mrb[1].mxu0  ;;  %v220_v34 = vadd.f32 %v1072_v19, %v989_v18 }
 0x14c   :  { %v215_v21 = vadd.f32 %v989_v18, %v214_v20 }
 0x14d   :  { %v234_v37 = vmax.f32 %v220_v34, 0.0  ;;  %v739_v34 = vld [vmem:[#allocation11 + $0x18] sm:$0xff] }
 0x14e   :  { %v233_v22 = vmax.f32 %v215_v21, 0.0  ;;  %v1075_v23 = vpop.f32.mrb[2].mxu0 }
 0x14f   :  { %v224_v24 = vpop.f32.mrb[3].mxu0  ;;  %v230_v32 = vadd.f32 %v1075_v23, %v989_v18 }
 0x150   :  { %v225_v25 = vadd.f32 %v989_v18, %v224_v24  ;;  %1089 = vmatprep.mubr.msk.f32.mxu1 %vm135_vm0, %v233_v22  ;;  %v736_v24 = vld [vmem:[#allocation11] sm:$0xff] }
 0x151   :  { %v236_v36 = vmax.f32 %v230_v32, 0.0 }
 0x152   :  { %v235_v27 = vmax.f32 %v225_v25, 0.0  ;;  %v1086_v28 = vpop.f32.mrb[4].mxu0  ;;  %v737_v25 = vld [vmem:[#allocation11 + $0x8] sm:$0xff] }
 0x153   :  { %v326_v29 = vadd.f32 %v1086_v28, %v994_v26  ;;  %v320_v30 = vpop.f32.mrb[5].mxu0 }
 0x154   :  { %v321_v31 = vadd.f32 %v994_v26, %v320_v30  ;;  %1094 = vmatprep.mubr.msk.f32.mxu0 %vm135_vm0, %v235_v27  ;;  %v1151_v26 = vpack.c.bf16 %v737_v25, %v736_v24 }
 0x155   :  { %v330_v33 = vmax.f32 %v326_v29, 0.0 }
 0x156   :  { %v329_v35 = vmax.f32 %v321_v31, 0.0 }
 0x157   :  { %1092 = vmatprep.subr.msk.mxu0 %vm135_vm0, %v330_v33 }
 0x158   :  { %1087 = vmatprep.subr.msk.mxu1 %vm135_vm0, %v329_v35  ;;  %1093 = vmatpush3.xpose.msk.msra.mxu0 %vm135_vm0, %v330_v33  ;;  %v738_v33 = vld [vmem:[#allocation11 + $0x10] sm:$0xff] }
 0x159   :  { %1088 = vmatpush3.xpose.msk.msra.mxu1 %vm135_vm0, %v329_v35  ;;  %1102 = vmatprep.subr.mxu0 %v123_v17  ;;  %v1155_v38 = vpack.c.bf16 %v739_v34, %v738_v33 }
 0x15a   :  { %1097 = vmatprep.subr.mxu1 %v122_v16 }
 0x15b   :  { %1095 = vmatmul.mubr.msk.f32.vlgmr.msra.gmra.mrb[6].mxu0 %vm135_vm0, %v236_v36 }
 0x15c   :  { %1090 = vmatmul.mubr.msk.f32.vlgmr.msra.gmra.mrb[0].mxu1 %vm135_vm0, %v234_v37  ;;  %1103 = vmatpush3.msra.mxu0 %v123_v17 }
 0x15d   :  { %1098 = vmatpush3.msra.mxu1 %v122_v16 }
 0x15e   :  { %1152 = vmatprep.subr.bf16.mxu1 %v1151_v26 }
 0x22e   :  { %v1096_v46 = vpop.f32.mrb[6].mxu0 }
 0x22f   :  { %v1091_v48 = vpop.f32.mrb[0].mxu1  ;;  %v490_v49 = vpop.f32.mrb[7].mxu0  ;;  %v502_v51 = vmul.f32 0.17677669, %v1096_v46  ;;  %v735_v46 = vld [vmem:[#allocation10 + $0x18] sm:$0xff] }
 0x230   :  { %v501_v52 = vmul.f32 0.17677669, %v490_v49  ;;  %v406_v53 = vpop.f32.mrb[1].mxu1  ;;  %v500_v54 = vmul.f32 0.17677669, %v1091_v48  ;;  %v1163_v49 = vpack.c.bf16 %v735_v46, %v734_v45 }
 0x231   :  { %v499_v55 = vmul.f32 0.17677669, %v406_v53  ;;  %v524_v59 = vadd.f32 %v518_v47, %v502_v51 }
 0x232   :  { %v523_v56 = vadd.f32 %v518_v47, %v501_v52  ;;  %v522_v61 = vadd.f32 %v514_v50, %v500_v54  ;;  %v1015_v52 = vld [vmem:[%s1654_s9] ss:$0 sm:$0xff]  ;;  %s1394_s9 = smov [#allocation13]  }
 0x233   :  { %v521_v57 = vadd.f32 %v514_v50, %v499_v55  ;;  %v535_v62 = vsel %vm525_vm3, %v524_v59, -inf  ;;  %s974_s5 = sshll.u32 %s1394_s9, 4  ;;  %s975_s5 = int_to_ptr.vmem [resolvable:$true] %s974_s5 }
 0x234   :  { %v532_v58 = vsel %vm525_vm3, %v523_v56, -inf  ;;  %v529_v63 = vsel %vm525_vm3, %v522_v61, -inf  ;;  %s1353_s16 = scalar_lea.vmem %s975_s5, 512  ;;  %p1358_p7 = scmp.lt.s32.totalorder %s975_s5, %s975_s5 }
 0x235   :  { %533 = vmax.xlane.f32.xlu1 %v532_v58  ;;  %v526_v60 = vsel %vm525_vm3, %v521_v57, -inf  ;;  %p1354_p6 = scmp.ne.s32.totalorder %s975_s5, %s1353_s16  ;;  %p1359_p8 = scmp.lt.s32.totalorder %s1353_s16, %s1353_s16 }
 0x236   :  { %527 = vmax.xlane.f32.xlu0 %v526_v60 }
 0x237   :  { %p1360_p9 = por %p1359_p8, %p1358_p7 }
 0x239   :  { %536 = vmax.xlane.f32.xlu1 %v535_v62  ;;  %p1361_p10 = pnand %p1360_p9, %p1354_p6 }
 0x23a   :  { %530 = vmax.xlane.f32.xlu0 %v529_v63 }
 0x2c2   :  { %v534_v0 = vpop.xlane.xlu1 %533 }
 0x2c3   :  { %v540_v1 = vsub.f32 %v523_v56, %v534_v0  ;;  %v528_v2 = vpop.xlane.xlu0 %527 }
 0x2c4   :  { %v538_v3 = vsub.f32 %v521_v57, %v528_v2 }
 0x2c5   :  { %v546_v4 = vmul.f32 1.442695, %v540_v1 }
 0x2c6   :  { %v542_v6 = vmul.f32 1.442695, %v538_v3  ;;  %v537_v7 = vpop.xlane.xlu1 %536 }
 0x2c7   :  { %v541_v8 = vsub.f32 %v524_v59, %v537_v7  ;;  %v531_v9 = vpop.xlane.xlu0 %530 }
 0x2c8   :  { %1181 = vpow2.f32 %v542_v6  ;;  %v539_v10 = vsub.f32 %v522_v61, %v531_v9 }
 0x2c9   :  { %1183 = vpow2.f32 %v546_v4  ;;  %v548_v11 = vmul.f32 1.442695, %v541_v8 }
 0x2ca   :  { %v544_v14 = vmul.f32 1.442695, %v539_v10 }
 0x2cc   :  { %1185 = vpow2.f32 %v544_v14 }
 0x2cd   :  { %1187 = vpow2.f32 %v548_v11 }
 0x2d2   :  { %v1182_v16 = vpop.eup %1181 }
 0x2d3   :  { %v550_v17 = vsel %vm525_vm3, %v1182_v16, 0.0  ;;  %v1184_v18 = vpop.eup %1183 }
 0x2d4   :  { %551 = vadd.xlane.f32.xlu0 %v550_v17  ;;  %v556_v20 = vsel %vm525_vm3, %v1184_v18, 0.0 }
 0x2d6   :  { %v1186_v19 = vpop.eup %1185 }
 0x2d7   :  { %v553_v21 = vsel %vm525_vm3, %v1186_v19, 0.0  ;;  %v1188_v22 = vpop.eup %1187 }
 0x2d8   :  { %557 = vadd.xlane.f32.xlu0 %v556_v20  ;;  %554 = vadd.xlane.f32.xlu1 %v553_v21  ;;  %v559_v23 = vsel %vm525_vm3, %v1188_v22, 0.0 }
 0x2dc   :  { %560 = vadd.xlane.f32.xlu1 %v559_v23 }
 0x361   :  { %v552_v27 = vpop.xlane.xlu0 %551 }
 0x362   :  { %1189 = vrcp.f32 %v552_v27 }
 0x365   :  { %v555_v28 = vpop.xlane.xlu1 %554  ;;  %v558_v29 = vpop.xlane.xlu0 %557 }
 0x366   :  { %1191 = vrcp.f32 %v555_v28 }
 0x367   :  { %1193 = vrcp.f32 %v558_v29 }
 0x369   :  { %v561_v30 = vpop.xlane.xlu1 %560 }
 0x36a   :  { %1195 = vrcp.f32 %v561_v30 }
 0x36c   :  { %v1190_v31 = vpop.eup %1189 }
 0x36d   :  { %v566_v32 = vmul.f32 %v1190_v31, %v1182_v16 }
 0x36f   :  { %1099 = vmatprep.mubr.msk.f32.mxu1 %vm525_vm3, %v566_v32 }
 0x370   :  { %v1192_v35 = vpop.eup %1191 }
 0x371   :  { %v1194_v36 = vpop.eup %1193  ;;  %v567_v37 = vmul.f32 %v1192_v35, %v1186_v19 }
 0x372   :  { %v568_v39 = vmul.f32 %v1194_v36, %v1184_v18 }
 0x373   :  { %1100 = vmatmul.mubr.msk.f32.vlgmr.msra.gmra.mrb[2].mxu1 %vm525_vm3, %v567_v37 }
 0x374   :  { %v1196_v40 = vpop.eup %1195  ;;  %1104 = vmatprep.mubr.msk.f32.mxu0 %vm525_vm3, %v568_v39  ;;  %1154 = vmatpush3.bf16.msra.mxu1 %v1151_v26 }
 0x375   :  { %v569_v41 = vmul.f32 %v1196_v40, %v1188_v22  ;;  %1156 = vmatprep.subr.bf16.mxu1 %v1155_v38 }
 0x377   :  { %1105 = vmatmul.mubr.msk.f32.vlgmr.msra.gmra.mrb[8].mxu0 %vm525_vm3, %v569_v41 }
 0x378   :  { %1158 = vmatpush3.bf16.msra.mxu1 %v1155_v38 }
 0x379   :  { %1160 = vmatprep.subr.bf16.mxu1 %v1159_v44 }
 0x446   :  { %v1101_v47 = vpop.f32.mrb[2].mxu1 }
 0x447   :  { %v642_v48 = vpop.f32.mrb[3].mxu1 }
 0x448   :  { %1115 = vmatprep.mubr.msk.f32.mxu1 %vm135_vm0, %v642_v48 }
 0x449   :  { %1116 = vmatmul.mubr.msk.f32.vlgmr.msra.gmra.mrb[4].mxu1 %vm135_vm0, %v1101_v47 }
 0x44a   :  { %v1106_v50 = vpop.f32.mrb[8].mxu0  ;;  %1162 = vmatpush3.bf16.msra.mxu1 %v1159_v44 }
 0x44b   :  { %v723_v51 = vpop.f32.mrb[9].mxu0  ;;  %1164 = vmatprep.subr.bf16.mxu1 %v1163_v49 }
 0x44c   :  { %1118 = vmatprep.mubr.msk.f32.mxu1 %vm135_vm0, %v723_v51 }
 0x44d   :  { %1119 = vmatmul.mubr.msk.f32.gmra.mrb[6].mxu1 %vm135_vm0, %v1106_v50 }
 0x44e   :  { %1166 = vmatpush3.bf16.msra.mxu1 %v1163_v49  ;;  %1129 = vmatprep.mubr.msk.f32.mxu1 %vm135_vm0, %v1561_v5 }
 0x451   :  { %1130 = vmatmul.mubr.msk.f32.vlgmr.msra.gmra.mrb[4].mxu1 %vm135_vm0, %v1565_v12 }
 0x452   :  { %1132 = vmatprep.mubr.msk.f32.mxu1 %vm135_vm0, %v1567_v13 }
 0x455   :  { %1133 = vmatmul.mubr.msk.f32.gmra.mrb[6].mxu1 %vm135_vm0, %v1573_v15 }
 0x524   :  { %v1131_v53 = vpop.f32.mrb[4].mxu1 }
 0x525   :  { %v930_v54 = vadd.f32 %v1131_v53, %v1015_v52  ;;  %v903_v55 = vpop.f32.mrb[5].mxu1 }
 0x526   :  { %v929_v56 = vadd.f32 %v1015_v52, %v903_v55 }
 0x527   :  { %v1017_v57 = vmul.f32 -1.442695, %v930_v54 }
 0x528   :  { %v1016_v58 = vmul.f32 -1.442695, %v929_v56  ;;  %v1134_v5 = vpop.f32.mrb[6].mxu1 }
 0x529   :  { %1197 = vpow2.f32 %v1017_v57  ;;  %v932_v59 = vadd.f32 %v1134_v5, %v1015_v52  ;;  %v913_v12 = vpop.f32.mrb[7].mxu1 }
 0x52a   :  { %1199 = vpow2.f32 %v1016_v58  ;;  %v931_v60 = vadd.f32 %v1015_v52, %v913_v12 }
 0x52b   :  { %v1019_v13 = vmul.f32 -1.442695, %v932_v59 }
 0x52c   :  { %v1018_v61 = vmul.f32 -1.442695, %v931_v60 }
 0x52d   :  { %1201 = vpow2.f32 %v1019_v13 }
 0x52e   :  { %1203 = vpow2.f32 %v1018_v61 }
 0x52f   :  { %1205 = vtanh.f32 %v930_v54 }
 0x530   :  { %1207 = vtanh.f32 %v929_v56 }
 0x533   :  { %v1198_v15 = vpop.eup %1197 }
 0x534   :  { %v1200_v62 = vpop.eup %1199  ;;  %v946_v63 = vadd.f32 1.0, %v1198_v15 }
 0x535   :  { %v945_v0 = vadd.f32 1.0, %v1200_v62 }
 0x536   :  { %1209 = vrcp.f32 %v946_v63 }
 0x537   :  { %v1202_v1 = vpop.eup %1201  ;;  %1211 = vrcp.f32 %v945_v0 }
 0x538   :  { %v1204_v2 = vpop.eup %1203  ;;  %v948_v3 = vadd.f32 1.0, %v1202_v1  ;;  %1213 = vtanh.f32 %v932_v59 }
 0x539   :  { %v947_v4 = vadd.f32 1.0, %v1204_v2  ;;  %1215 = vtanh.f32 %v931_v60  ;;  %v1206_v6 = vpop.eup %1205 }
 0x53a   :  { %1217 = vrcp.f32 %v948_v3  ;;  %v1208_v7 = vpop.eup %1207 }
 0x53b   :  { %1219 = vrcp.f32 %v947_v4 }
 0x540   :  { %v1210_v8 = vpop.eup %1209 }
 0x541   :  { %v1212_v9 = vpop.eup %1211  ;;  %v962_v10 = vmul.f32 %v1210_v8, %v1206_v6 }
 0x542   :  { %v1214_v11 = vpop.eup %1213  ;;  %v961_v14 = vmul.f32 %v1212_v9, %v1208_v7 }
 0x543   :  { %v1216_v16 = vpop.eup %1215  ;;  %966 = vst.msk [vmem:[#allocation13 + $0x8] sm:$0xff] %vm135_vm0, %v962_v10 }
 0x544   :  { %v1218_v17 = vpop.eup %1217  ;;  %965 = vst.msk [vmem:[#allocation13] sm:$0xff] %vm135_vm0, %v961_v14 }
 0x545   :  { %v1220_v18 = vpop.eup %1219  ;;  %v964_v19 = vmul.f32 %v1218_v17, %v1214_v11 }
 0x546   :  { %v963_v20 = vmul.f32 %v1220_v18, %v1216_v16 }
 0x547   :  { %968 = vst.msk [vmem:[#allocation13 + $0x18] sm:$0xff] %vm135_vm0, %v964_v19 }
 0x548   :  { %967 = vst.msk [vmem:[#allocation13 + $0x10] sm:$0xff] %vm135_vm0, %v963_v20 }
 0x549   :  { %1364 = shalt.err (!%p1361_p10)
}
 0x54a   :  { %s1365_s3 = scalar_lea.hbm %s1655_s10, 512 }
 0x54b   :  { %p1366_p11 = scmp.ne.s32.totalorder %s1655_s10, %s1365_s3  ;;  %p1369_p12 = scmp.lt.u32.totalorder %s1365_s3, %s1655_s10 }
 0x54d   :  { %p1371_p13 = pnand %p1369_p12, %p1366_p11 }
 0x54f   :  { %1374 = shalt.err (!%p1371_p13)
}
 0x550   :  { %980 = dma.vmem_to_hbm [thread:$0]  %s975_s5, 512, %s1655_s10, [#allocation4], %s1387_s25, %s1387_s25, %s1388_s26  }
 0x551   :  { %1383 = dma.done.wait [#allocation4], 512  }
 0x552   :  { %1384 = vsyncadd [#allocation4], 4294966784 }
 0x553   :  { %984 = vsyncpa [#allocation3], 1 }
 0x554   :  { %985 = vsyncpa [#allocation6], 1 }
 0x555   :  { %986 = vsyncpa [#allocation9], 1 }
 0x556   :  { %987 = vsyncpa [#allocation12], 1 }
 0x557   :  { %988 = vsyncpa [#allocation4], 1 }

</bundles_post_ra>
